<compile_context>
chip_gen: v7x
topology: tpu7x:2x2x1
jax: 0.10.0
libtpu: 0.0.40
codegen_flags: <defaults>
</compile_context>

<pallas_src>
import functools

import jax
import jax.numpy as jnp
import numpy as np
from jax import lax
from jax.experimental import pallas as pl
from jax.experimental.pallas import tpu as pltpu


def _round_up(a, b):
    return (a + b - 1) // b * b


# ------------------------------------------------------------------------------
# Fused kernel: one image per grid step.
# ------------------------------------------------------------------------------
def head_kernel(x_ref, w1_ref, wd_ref, w2_ref, w3_ref, tsh_ref, b3_ref,
                out_ref, shift_ref, col_ref, *, H, W, Cin, C, PAD):
    f32 = jnp.float32
    HW = H * W
    cdt = shift_ref.dtype                  # matmul / scratch dtype (bf16 or f32)

    # Re-zero the vertical-halo columns every grid step (cheap: 2*PAD columns).
    # Keeps the kernel correct under the "parallel" grid axis, where each core
    # owns an independent, uninitialized scratch instance.
    zh = jnp.zeros((shift_ref.shape[0], PAD), cdt)
    shift_ref[:, pl.ds(0, PAD)] = zh
    shift_ref[:, pl.ds(PAD + HW, PAD)] = zh

    # Column masks for the two horizontally pre-shifted copies. Kept in f32 so
    # the (exact 0/1) multiplies stay on the native-f32 VPU path (v5e).
    col = lax.broadcasted_iota(jnp.int32, (1, HW), 1) % W
    mask_l = (col > 0).astype(f32)          # valid where col > 0      (dx = -1)
    mask_r = (col < W - 1).astype(f32)      # valid where col < W - 1  (dx = +1)

    def conv3x3(act, cin, w_ref):
        """act: [cin, HW] f32  ->  w_ref @ im2col(act): [cout, HW] f32."""
        # (1) Three horizontally pre-shifted, pre-masked copies of the activation.
        #     The rolls run on the otherwise-idle XLU; (HW-1) == roll by -1.
        act_l = pltpu.roll(act, 1, axis=1) * mask_l         # holds act[.., col-1]
        act_r = pltpu.roll(act, HW - 1, axis=1) * mask_r    # holds act[.., col+1]
        shift_ref[pl.ds(0 * cin, cin), pl.ds(PAD, HW)] = act_l.astype(cdt)
        shift_ref[pl.ds(1 * cin, cin), pl.ds(PAD, HW)] = act.astype(cdt)
        shift_ref[pl.ds(2 * cin, cin), pl.ds(PAD, HW)] = act_r.astype(cdt)
        # (2) Stack the 9 (dy, dx) taps into the im2col scratch. The dy shift is a
        #     slice into the zero halo, so no masking is needed here.
        for ky in range(3):
            for kx in range(3):
                t = ky * 3 + kx
                col_ref[pl.ds(t * cin, cin), :] = (
                    shift_ref[pl.ds(kx * cin, cin),
                              pl.ds(PAD + (ky - 1) * W, HW)])
        kc, kcp = 9 * cin, w_ref.shape[1]
        if kcp > kc:
            # Contraction-padding rows: the matching weight columns are zero, but
            # 0 * uninitialized-garbage could be NaN, so zero them explicitly.
            col_ref[pl.ds(kc, kcp - kc), :] = jnp.zeros((kcp - kc, HW), cdt)
        # (3) One fat MXU matmul: [cout, 9*cin(+pad)] x [9*cin(+pad), HW] -> f32.
        return jnp.dot(w_ref[...], col_ref[pl.ds(0, kcp), :],
                       preferred_element_type=f32)

    x = x_ref[0].astype(f32)               # [Cin, HW]; f32 straight from HBM
    tsh = tsh_ref[...]                     # [3, C, 1] f32: bn1 / bn_d / bn2 shifts

    # BasicBlock main path: conv1 (bn1 scale folded into w1) -> +shift -> relu.
    y1 = jnp.maximum(conv3x3(x, Cin, w1_ref) + tsh[0], 0.0)

    # Residual: NormConv downsample = 1x1 conv (bn_d scale folded) -> +shift.
    # Reuse the center tap of conv1's im2col: rows [4*Cin, 5*Cin) hold x already
    # cast to the matmul dtype (matched bf16 operands, no extra cast).
    res = jnp.dot(wd_ref[...], col_ref[pl.ds(4 * Cin, Cin), :],
                  preferred_element_type=f32) + tsh[1]

    # conv2 (bn2 scale folded) -> +shift, add residual, relu.
    blk = jnp.maximum(conv3x3(y1, C, w2_ref) + tsh[2] + res, 0.0)

    # Final 3x3 conv (channels -> out_channels) with bias.
    out = conv3x3(blk, C, w3_ref) + b3_ref[...]
    out_ref[0] = out.astype(out_ref.dtype)  # lane-dense [K, HW] store


# ------------------------------------------------------------------------------
# Wrapper.
# ------------------------------------------------------------------------------
def head_forward(feat, params, *, compute_dtype=jnp.bfloat16):
    """feat: [B, Cin, H, W] (NCHW) -> [B, K, H, W] (NCHW), f32."""
    B, Cin, H, W = feat.shape
    C = params["w1"].shape[1]
    K = params["w3"].shape[1]
    HW = H * W
    PAD = _round_up(W + 1, 128)            # lane-aligned interior start of the halo
    HWP = HW + 2 * PAD
    cd = compute_dtype
    f32 = jnp.float32

    # --- parameter prep (would be cached once in production) -------------------
    # Fold the BatchNorm scale into the conv weights in f32 (so bf16 rounding is
    # unchanged to first order), reorder to the im2col layout [Cout, 9*Cin]
    # (column = tap*Cin + cin), pad the contraction to the bf16 sublane granule.
    def prep3x3(w9, scale=None):
        w = w9.astype(f32)
        if scale is not None:
            w = w * scale.astype(f32)[None, :, :]          # per-output-channel
        cout, cin = w.shape[1], w.shape[2]
        w = jnp.transpose(w, (1, 0, 2)).reshape(cout, 9 * cin)
        kcp = _round_up(9 * cin, 16)
        if kcp > 9 * cin:
            w = jnp.pad(w, ((0, 0), (0, kcp - 9 * cin)))
        return w.astype(cd)

    w1 = prep3x3(params["w1"], params["s1"])
    w2 = prep3x3(params["w2"], params["s2"])
    w3 = prep3x3(params["w3"])                              # final conv: no BN
    wd = (params["wd"].astype(f32) * params["sd"].astype(f32)).astype(cd)
    tsh = jnp.stack([params["t1"], params["td"], params["t2"]]).astype(f32)
    b3 = params["b3"].astype(f32)

    # Activations go to the kernel in their HBM dtype — no wrapper-side cast pass
    # (the bf16 cast happens inside the kernel at the scratch store).
    x = feat.reshape(B, Cin, HW)                            # free reshape, NCHW kept

    KCP1, KCP2 = w1.shape[1], w2.shape[1]
    Cmax = max(Cin, C)

    kern = functools.partial(head_kernel, H=H, W=W, Cin=Cin, C=C, PAD=PAD)

    out = pl.pallas_call(
        kern,
        grid=(B,),
        in_specs=[
            pl.BlockSpec((1, Cin, HW), lambda b: (b, 0, 0)),   # x
            pl.BlockSpec((C, KCP1), lambda b: (0, 0)),         # w1 (bn1-folded)
            pl.BlockSpec((C, Cin), lambda b: (0, 0)),          # wd (bn_d-folded)
            pl.BlockSpec((C, KCP2), lambda b: (0, 0)),         # w2 (bn2-folded)
            pl.BlockSpec((K, KCP2), lambda b: (0, 0)),         # w3 (final conv)
            pl.BlockSpec((3, C, 1), lambda b: (0, 0, 0)),      # bn shifts (t1,td,t2)
            pl.BlockSpec((K, 1), lambda b: (0, 0)),            # b3
        ],
        out_specs=pl.BlockSpec((1, K, HW), lambda b: (b, 0, 0)),
        out_shape=jax.ShapeDtypeStruct((B, K, HW), jnp.float32),
        scratch_shapes=[
            pltpu.VMEM((3 * Cmax, HWP), cd),                   # 3 dx-shifted copies + halo
            pltpu.VMEM((max(KCP1, KCP2), HW), cd),             # im2col stack
        ],
        compiler_params=pltpu.CompilerParams(
            dimension_semantics=("parallel",)),                # images independent
    )(x, w1, wd, w2, w3, tsh, b3)

    return out.reshape(B, K, H, W)                             # free reshape


# ------------------------------------------------------------------------------
# Pure-JAX reference (mirrors the weight folding and compute-dtype casts).
# ------------------------------------------------------------------------------
def ref_forward(feat, params, *, compute_dtype=jnp.bfloat16):
    f32 = jnp.float32
    hi = lax.Precision.HIGHEST

    def cast(a):
        return a.astype(compute_dtype).astype(f32)

    x = jnp.transpose(feat, (0, 2, 3, 1))                      # NHWC
    xb = cast(x)

    def conv3x3(inp, w9, scale=None):                          # w9: [9, cout, cin]
        w = w9.astype(f32)
        if scale is not None:
            w = w * scale.astype(f32)[None, :, :]
        cout, cin = w.shape[1], w.shape[2]
        w = cast(w).reshape(3, 3, cout, cin).transpose(0, 1, 3, 2)   # HWIO
        return lax.conv_general_dilated(
            inp, w, (1, 1), "SAME",
            dimension_numbers=("NHWC", "HWIO", "NHWC"), precision=hi)

    y1 = jnp.maximum(conv3x3(xb, params["w1"], params["s1"]) + params["t1"][:, 0], 0.0)
    wdf = cast(params["wd"].astype(f32) * params["sd"].astype(f32))
    res = jnp.einsum("bhwc,dc->bhwd", xb, wdf, precision=hi) + params["td"][:, 0]
    y2 = conv3x3(cast(y1), params["w2"], params["s2"]) + params["t2"][:, 0]
    blk = jnp.maximum(y2 + res, 0.0)
    y3 = conv3x3(cast(blk), params["w3"]) + params["b3"][:, 0]
    return jnp.transpose(y3, (0, 3, 1, 2))                     # NCHW


if __name__ == "__main__":
    B, Cin, C, K, H, W = 2, 16, 16, 4, 16, 16
    key = jax.random.PRNGKey(0)
    ks = jax.random.split(key, 10)

    def bn_raw(k, c):
        k1, k2, k3, k4 = jax.random.split(k, 4)
        gamma = 1.0 + 0.2 * jax.random.normal(k1, (c,), jnp.float32)
        beta = 0.1 * jax.random.normal(k2, (c,), jnp.float32)
        mean = 0.1 * jax.random.normal(k3, (c,), jnp.float32)
        var = 1.0 + 0.2 * jax.random.uniform(k4, (c,), jnp.float32)
        return gamma, beta, mean, var

    def fold_bn(gamma, beta, mean, var, eps=1e-5):
        s = gamma * lax.rsqrt(var + eps)
        t = beta - mean * s
        return s.reshape(-1, 1), t.reshape(-1, 1)

    s1, t1 = fold_bn(*bn_raw(ks[0], C))
    s2, t2 = fold_bn(*bn_raw(ks[1], C))
    sd, td = fold_bn(*bn_raw(ks[2], C))

    params = {
        "w1": jax.random.normal(ks[3], (9, C, Cin), jnp.float32) / np.sqrt(9 * Cin),
        "s1": s1, "t1": t1,
        "w2": jax.random.normal(ks[4], (9, C, C), jnp.float32) / np.sqrt(9 * C),
        "s2": s2, "t2": t2,
        "wd": jax.random.normal(ks[5], (C, Cin), jnp.float32) / np.sqrt(Cin),
        "sd": sd, "td": td,
        "w3": jax.random.normal(ks[6], (9, K, C), jnp.float32) / np.sqrt(9 * C),
        "b3": 0.1 * jax.random.normal(ks[7], (K, 1), jnp.float32),
    }
    feat = jax.random.normal(ks[8], (B, Cin, H, W), jnp.float32)   # NCHW input

    # f32 end-to-end: tight structural check against the pure-JAX reference.
    out32 = jax.block_until_ready(head_forward(feat, params, compute_dtype=jnp.float32))
    ref32 = ref_forward(feat, params, compute_dtype=jnp.float32)
    np.testing.assert_allclose(np.asarray(out32), np.asarray(ref32),
                               rtol=1e-4, atol=2e-4)

    # bf16 matmul inputs (production config): check vs bf16-mirroring reference.
    out16 = jax.block_until_ready(head_forward(feat, params, compute_dtype=jnp.bfloat16))
    ref16 = ref_forward(feat, params, compute_dtype=jnp.bfloat16)
    np.testing.assert_allclose(np.asarray(out16), np.asarray(ref16),
                               rtol=5e-3, atol=2e-3)

    assert out16.shape == (B, K, H, W)
    print("KERNEL_OK")
</pallas_src>

<mosaic_0001>
module attributes {stable_mosaic.version = 11 : i64} {
  func.func @head_kernel(%arg0: i32, %arg1: memref<1x16x256xf32, #tpu.memory_space<vmem>>, %arg2: memref<16x144xf32, #tpu.memory_space<vmem>>, %arg3: memref<16x16xf32, #tpu.memory_space<vmem>>, %arg4: memref<16x144xf32, #tpu.memory_space<vmem>>, %arg5: memref<4x144xf32, #tpu.memory_space<vmem>>, %arg6: memref<3x16x1xf32, #tpu.memory_space<vmem>>, %arg7: memref<4x1xf32, #tpu.memory_space<vmem>>, %arg8: memref<1x4x256xf32, #tpu.memory_space<vmem>>, %arg9: memref<48x512xf32, #tpu.memory_space<vmem>>, %arg10: memref<144x256xf32, #tpu.memory_space<vmem>>) attributes {dimension_semantics = [#tpu.dimension_semantics<parallel>], iteration_bounds = array<i64: 2>, scalar_prefetch = 0 : i64, scratch_operands = 2 : i64, tpu.core_type = #tpu.core_type<tc>, window_params = [{transform_indices = @transform_0, window_bounds = array<i64: 1, 16, 256>}, {pipeline_mode = #tpu.pipeline_mode<synchronous>, transform_indices = @transform_1, window_bounds = array<i64: 16, 144>}, {pipeline_mode = #tpu.pipeline_mode<synchronous>, transform_indices = @transform_2, window_bounds = array<i64: 16, 16>}, {pipeline_mode = #tpu.pipeline_mode<synchronous>, transform_indices = @transform_3, window_bounds = array<i64: 16, 144>}, {pipeline_mode = #tpu.pipeline_mode<synchronous>, transform_indices = @transform_4, window_bounds = array<i64: 4, 144>}, {pipeline_mode = #tpu.pipeline_mode<synchronous>, transform_indices = @transform_5, window_bounds = array<i64: 3, 16, 1>}, {pipeline_mode = #tpu.pipeline_mode<synchronous>, transform_indices = @transform_6, window_bounds = array<i64: 4, 1>}, {transform_indices = @transform_7, window_bounds = array<i64: 1, 4, 256>}]} {
    %cst = arith.constant 0.000000e+00 : f32
    %0 = vector.broadcast %cst : f32 to vector<48x128xf32>
    %c0 = arith.constant 0 : index
    %c0_0 = arith.constant 0 : index
    %1 = vector.load %arg9[%c0, %c0_0] : memref<48x512xf32, #tpu.memory_space<vmem>>, vector<48x128xf32>
    tpu.vector_store %arg9[%c0, %c0_0], %0 {strides = array<i32>} : memref<48x512xf32, #tpu.memory_space<vmem>>, vector<48x128xf32>,
    %c0_1 = arith.constant 0 : index
    %c384 = arith.constant 384 : index
    %2 = vector.load %arg9[%c0_1, %c384] : memref<48x512xf32, #tpu.memory_space<vmem>>, vector<48x128xf32>
    tpu.vector_store %arg9[%c0_1, %c384], %0 {strides = array<i32>} : memref<48x512xf32, #tpu.memory_space<vmem>>, vector<48x128xf32>,
    %3 = tpu.iota {dimensions = array<i32: 1>} : vector<1x256xi32>
    %c16_i32 = arith.constant 16 : i32
    %c0_i32 = arith.constant 0 : i32
    %4 = arith.cmpi eq, %c16_i32, %c0_i32 : i32
    %c1_i32 = arith.constant 1 : i32
    %5 = arith.select %4, %c1_i32, %c16_i32 : i32
    %6 = vector.broadcast %5 : i32 to vector<1x256xi32>
    %7 = arith.remsi %3, %6 : vector<1x256xi32>
    %c0_i32_2 = arith.constant 0 : i32
    %8 = vector.broadcast %c0_i32_2 : i32 to vector<1x256xi32>
    %9 = arith.cmpi ne, %7, %8 : vector<1x256xi32>
    %c0_i32_3 = arith.constant 0 : i32
    %10 = vector.broadcast %c0_i32_3 : i32 to vector<1x256xi32>
    %11 = arith.cmpi slt, %7, %10 : vector<1x256xi32>
    %c0_i32_4 = arith.constant 0 : i32
    %12 = arith.cmpi slt, %5, %c0_i32_4 : i32
    %13 = vector.broadcast %12 : i1 to vector<1x256xi1>
    %14 = vector.broadcast %13 : vector<1x256xi1> to vector<1x256xi1>
    %15 = arith.xori %11, %14 : vector<1x256xi1>
    %16 = arith.andi %15, %9 : vector<1x256xi1>
    %17 = vector.broadcast %5 : i32 to vector<1x256xi32>
    %18 = arith.addi %7, %17 : vector<1x256xi32>
    %19 = arith.select %16, %18, %7 : vector<1x256xi1>, vector<1x256xi32>
    %c0_i32_5 = arith.constant 0 : i32
    %20 = vector.broadcast %c0_i32_5 : i32 to vector<1x256xi32>
    %21 = arith.cmpi sgt, %19, %20 : vector<1x256xi32>
    %22 = arith.extui %21 : vector<1x256xi1> to vector<1x256xi32>
    %23 = arith.sitofp %22 : vector<1x256xi32> to vector<1x256xf32>
    %c15_i32 = arith.constant 15 : i32
    %24 = vector.broadcast %c15_i32 : i32 to vector<1x256xi32>
    %25 = arith.cmpi slt, %19, %24 : vector<1x256xi32>
    %26 = arith.extui %25 : vector<1x256xi1> to vector<1x256xi32>
    %27 = arith.sitofp %26 : vector<1x256xi32> to vector<1x256xf32>
    %c0_6 = arith.constant 0 : index
    %c0_7 = arith.constant 0 : index
    %c0_8 = arith.constant 0 : index
    %28 = vector.load %arg1[%c0_6, %c0_7, %c0_8] : memref<1x16x256xf32, #tpu.memory_space<vmem>>, vector<1x16x256xf32>
    %29 = vector.shape_cast %28 : vector<1x16x256xf32> to vector<16x256xf32>
    %c0_9 = arith.constant 0 : index
    %c0_10 = arith.constant 0 : index
    %c0_11 = arith.constant 0 : index
    %30 = vector.load %arg6[%c0_9, %c0_10, %c0_11] : memref<3x16x1xf32, #tpu.memory_space<vmem>>, vector<3x16x1xf32>
    %c1_i32_12 = arith.constant 1 : i32
    %31 = tpu.dynamic_rotate %29 by %c1_i32_12 dim 1 : vector<16x256xf32>, i32 -> vector<16x256xf32>
    %32 = vector.broadcast %23 : vector<1x256xf32> to vector<16x256xf32>
    %33 = arith.mulf %31, %32 : vector<16x256xf32>
    %c255_i32 = arith.constant 255 : i32
    %34 = tpu.dynamic_rotate %29 by %c255_i32 dim 1 : vector<16x256xf32>, i32 -> vector<16x256xf32>
    %35 = vector.broadcast %27 : vector<1x256xf32> to vector<16x256xf32>
    %36 = arith.mulf %34, %35 : vector<16x256xf32>
    %c0_13 = arith.constant 0 : index
    %c128 = arith.constant 128 : index
    %37 = vector.load %arg9[%c0_13, %c128] : memref<48x512xf32, #tpu.memory_space<vmem>>, vector<16x256xf32>
    tpu.vector_store %arg9[%c0_13, %c128], %33 {strides = array<i32>} : memref<48x512xf32, #tpu.memory_space<vmem>>, vector<16x256xf32>,
    %c16 = arith.constant 16 : index
    %c128_14 = arith.constant 128 : index
    %38 = vector.load %arg9[%c16, %c128_14] : memref<48x512xf32, #tpu.memory_space<vmem>>, vector<16x256xf32>
    tpu.vector_store %arg9[%c16, %c128_14], %29 {strides = array<i32>} : memref<48x512xf32, #tpu.memory_space<vmem>>, vector<16x256xf32>,
    %c32 = arith.constant 32 : index
    %c128_15 = arith.constant 128 : index
    %39 = vector.load %arg9[%c32, %c128_15] : memref<48x512xf32, #tpu.memory_space<vmem>>, vector<16x256xf32>
    tpu.vector_store %arg9[%c32, %c128_15], %36 {strides = array<i32>} : memref<48x512xf32, #tpu.memory_space<vmem>>, vector<16x256xf32>,
    %c0_16 = arith.constant 0 : index
    %c112 = arith.constant 112 : index
    %40 = vector.load %arg9[%c0_16, %c112] : memref<48x512xf32, #tpu.memory_space<vmem>>, vector<16x256xf32>
    %c0_17 = arith.constant 0 : index
    %c0_18 = arith.constant 0 : index
    %41 = vector.load %arg10[%c0_17, %c0_18] : memref<144x256xf32, #tpu.memory_space<vmem>>, vector<16x256xf32>
    tpu.vector_store %arg10[%c0_17, %c0_18], %40 {strides = array<i32>} : memref<144x256xf32, #tpu.memory_space<vmem>>, vector<16x256xf32>,
    %c16_19 = arith.constant 16 : index
    %c112_20 = arith.constant 112 : index
    %42 = vector.load %arg9[%c16_19, %c112_20] : memref<48x512xf32, #tpu.memory_space<vmem>>, vector<16x256xf32>
    %c16_21 = arith.constant 16 : index
    %c0_22 = arith.constant 0 : index
    %43 = vector.load %arg10[%c16_21, %c0_22] : memref<144x256xf32, #tpu.memory_space<vmem>>, vector<16x256xf32>
    tpu.vector_store %arg10[%c16_21, %c0_22], %42 {strides = array<i32>} : memref<144x256xf32, #tpu.memory_space<vmem>>, vector<16x256xf32>,
    %c32_23 = arith.constant 32 : index
    %c112_24 = arith.constant 112 : index
    %44 = vector.load %arg9[%c32_23, %c112_24] : memref<48x512xf32, #tpu.memory_space<vmem>>, vector<16x256xf32>
    %c32_25 = arith.constant 32 : index
    %c0_26 = arith.constant 0 : index
    %45 = vector.load %arg10[%c32_25, %c0_26] : memref<144x256xf32, #tpu.memory_space<vmem>>, vector<16x256xf32>
    tpu.vector_store %arg10[%c32_25, %c0_26], %44 {strides = array<i32>} : memref<144x256xf32, #tpu.memory_space<vmem>>, vector<16x256xf32>,
    %c0_27 = arith.constant 0 : index
    %c128_28 = arith.constant 128 : index
    %46 = vector.load %arg9[%c0_27, %c128_28] : memref<48x512xf32, #tpu.memory_space<vmem>>, vector<16x256xf32>
    %c48 = arith.constant 48 : index
    %c0_29 = arith.constant 0 : index
    %47 = vector.load %arg10[%c48, %c0_29] : memref<144x256xf32, #tpu.memory_space<vmem>>, vector<16x256xf32>
    tpu.vector_store %arg10[%c48, %c0_29], %46 {strides = array<i32>} : memref<144x256xf32, #tpu.memory_space<vmem>>, vector<16x256xf32>,
    %c16_30 = arith.constant 16 : index
    %c128_31 = arith.constant 128 : index
    %48 = vector.load %arg9[%c16_30, %c128_31] : memref<48x512xf32, #tpu.memory_space<vmem>>, vector<16x256xf32>
    %c64 = arith.constant 64 : index
    %c0_32 = arith.constant 0 : index
    %49 = vector.load %arg10[%c64, %c0_32] : memref<144x256xf32, #tpu.memory_space<vmem>>, vector<16x256xf32>
    tpu.vector_store %arg10[%c64, %c0_32], %48 {strides = array<i32>} : memref<144x256xf32, #tpu.memory_space<vmem>>, vector<16x256xf32>,
    %c32_33 = arith.constant 32 : index
    %c128_34 = arith.constant 128 : index
    %50 = vector.load %arg9[%c32_33, %c128_34] : memref<48x512xf32, #tpu.memory_space<vmem>>, vector<16x256xf32>
    %c80 = arith.constant 80 : index
    %c0_35 = arith.constant 0 : index
    %51 = vector.load %arg10[%c80, %c0_35] : memref<144x256xf32, #tpu.memory_space<vmem>>, vector<16x256xf32>
    tpu.vector_store %arg10[%c80, %c0_35], %50 {strides = array<i32>} : memref<144x256xf32, #tpu.memory_space<vmem>>, vector<16x256xf32>,
    %c0_36 = arith.constant 0 : index
    %c144 = arith.constant 144 : index
    %52 = vector.load %arg9[%c0_36, %c144] : memref<48x512xf32, #tpu.memory_space<vmem>>, vector<16x256xf32>
    %c96 = arith.constant 96 : index
    %c0_37 = arith.constant 0 : index
    %53 = vector.load %arg10[%c96, %c0_37] : memref<144x256xf32, #tpu.memory_space<vmem>>, vector<16x256xf32>
    tpu.vector_store %arg10[%c96, %c0_37], %52 {strides = array<i32>} : memref<144x256xf32, #tpu.memory_space<vmem>>, vector<16x256xf32>,
    %c16_38 = arith.constant 16 : index
    %c144_39 = arith.constant 144 : index
    %54 = vector.load %arg9[%c16_38, %c144_39] : memref<48x512xf32, #tpu.memory_space<vmem>>, vector<16x256xf32>
    %c112_40 = arith.constant 112 : index
    %c0_41 = arith.constant 0 : index
    %55 = vector.load %arg10[%c112_40, %c0_41] : memref<144x256xf32, #tpu.memory_space<vmem>>, vector<16x256xf32>
    tpu.vector_store %arg10[%c112_40, %c0_41], %54 {strides = array<i32>} : memref<144x256xf32, #tpu.memory_space<vmem>>, vector<16x256xf32>,
    %c32_42 = arith.constant 32 : index
    %c144_43 = arith.constant 144 : index
    %56 = vector.load %arg9[%c32_42, %c144_43] : memref<48x512xf32, #tpu.memory_space<vmem>>, vector<16x256xf32>
    %c128_44 = arith.constant 128 : index
    %c0_45 = arith.constant 0 : index
    %57 = vector.load %arg10[%c128_44, %c0_45] : memref<144x256xf32, #tpu.memory_space<vmem>>, vector<16x256xf32>
    tpu.vector_store %arg10[%c128_44, %c0_45], %56 {strides = array<i32>} : memref<144x256xf32, #tpu.memory_space<vmem>>, vector<16x256xf32>,
    %c0_46 = arith.constant 0 : index
    %c0_47 = arith.constant 0 : index
    %58 = vector.load %arg2[%c0_46, %c0_47] : memref<16x144xf32, #tpu.memory_space<vmem>>, vector<16x144xf32>
    %c0_48 = arith.constant 0 : index
    %c0_49 = arith.constant 0 : index
    %59 = vector.load %arg10[%c0_48, %c0_49] : memref<144x256xf32, #tpu.memory_space<vmem>>, vector<144x256xf32>
    %cst_50 = arith.constant dense<0.000000e+00> : vector<16x256xf32>
    %60 = tpu.matmul %58, %59, %cst_50 {dimension_numbers = #tpu.dot_dimension_numbers<[1], [0], [0], [1], [0, 0, 1, 1], [], []>} : vector<16x144xf32>, vector<144x256xf32>, vector<16x256xf32> -> vector<16x256xf32>
    %61 = vector.extract_strided_slice %30 {offsets = [0, 0, 0], sizes = [1, 16, 1], strides = [1, 1, 1]} : vector<3x16x1xf32> to vector<1x16x1xf32>
    %62 = vector.shape_cast %61 : vector<1x16x1xf32> to vector<16x1xf32>
    %63 = vector.broadcast %62 : vector<16x1xf32> to vector<16x256xf32>
    %64 = arith.addf %60, %63 : vector<16x256xf32>
    %cst_51 = arith.constant 0.000000e+00 : f32
    %65 = vector.broadcast %cst_51 : f32 to vector<16x256xf32>
    %66 = arith.maximumf %64, %65 : vector<16x256xf32>
    %c0_52 = arith.constant 0 : index
    %c0_53 = arith.constant 0 : index
    %67 = vector.load %arg3[%c0_52, %c0_53] : memref<16x16xf32, #tpu.memory_space<vmem>>, vector<16x16xf32>
    %c64_54 = arith.constant 64 : index
    %c0_55 = arith.constant 0 : index
    %68 = vector.load %arg10[%c64_54, %c0_55] : memref<144x256xf32, #tpu.memory_space<vmem>>, vector<16x256xf32>
    %cst_56 = arith.constant dense<0.000000e+00> : vector<16x256xf32>
    %69 = tpu.matmul %67, %68, %cst_56 {dimension_numbers = #tpu.dot_dimension_numbers<[1], [0], [0], [1], [0, 0, 1, 1], [], []>} : vector<16x16xf32>, vector<16x256xf32>, vector<16x256xf32> -> vector<16x256xf32>
    %70 = vector.extract_strided_slice %30 {offsets = [1, 0, 0], sizes = [1, 16, 1], strides = [1, 1, 1]} : vector<3x16x1xf32> to vector<1x16x1xf32>
    %71 = vector.shape_cast %70 : vector<1x16x1xf32> to vector<16x1xf32>
    %72 = vector.broadcast %71 : vector<16x1xf32> to vector<16x256xf32>
    %73 = arith.addf %69, %72 : vector<16x256xf32>
    %c1_i32_57 = arith.constant 1 : i32
    %74 = tpu.dynamic_rotate %66 by %c1_i32_57 dim 1 : vector<16x256xf32>, i32 -> vector<16x256xf32>
    %75 = vector.broadcast %23 : vector<1x256xf32> to vector<16x256xf32>
    %76 = arith.mulf %74, %75 : vector<16x256xf32>
    %c255_i32_58 = arith.constant 255 : i32
    %77 = tpu.dynamic_rotate %66 by %c255_i32_58 dim 1 : vector<16x256xf32>, i32 -> vector<16x256xf32>
    %78 = vector.broadcast %27 : vector<1x256xf32> to vector<16x256xf32>
    %79 = arith.mulf %77, %78 : vector<16x256xf32>
    %c0_59 = arith.constant 0 : index
    %c128_60 = arith.constant 128 : index
    %80 = vector.load %arg9[%c0_59, %c128_60] : memref<48x512xf32, #tpu.memory_space<vmem>>, vector<16x256xf32>
    tpu.vector_store %arg9[%c0_59, %c128_60], %76 {strides = array<i32>} : memref<48x512xf32, #tpu.memory_space<vmem>>, vector<16x256xf32>,
    %c16_61 = arith.constant 16 : index
    %c128_62 = arith.constant 128 : index
    %81 = vector.load %arg9[%c16_61, %c128_62] : memref<48x512xf32, #tpu.memory_space<vmem>>, vector<16x256xf32>
    tpu.vector_store %arg9[%c16_61, %c128_62], %66 {strides = array<i32>} : memref<48x512xf32, #tpu.memory_space<vmem>>, vector<16x256xf32>,
    %c32_63 = arith.constant 32 : index
    %c128_64 = arith.constant 128 : index
    %82 = vector.load %arg9[%c32_63, %c128_64] : memref<48x512xf32, #tpu.memory_space<vmem>>, vector<16x256xf32>
    tpu.vector_store %arg9[%c32_63, %c128_64], %79 {strides = array<i32>} : memref<48x512xf32, #tpu.memory_space<vmem>>, vector<16x256xf32>,
    %c0_65 = arith.constant 0 : index
    %c112_66 = arith.constant 112 : index
    %83 = vector.load %arg9[%c0_65, %c112_66] : memref<48x512xf32, #tpu.memory_space<vmem>>, vector<16x256xf32>
    %c0_67 = arith.constant 0 : index
    %c0_68 = arith.constant 0 : index
    %84 = vector.load %arg10[%c0_67, %c0_68] : memref<144x256xf32, #tpu.memory_space<vmem>>, vector<16x256xf32>
    tpu.vector_store %arg10[%c0_67, %c0_68], %83 {strides = array<i32>} : memref<144x256xf32, #tpu.memory_space<vmem>>, vector<16x256xf32>,
    %c16_69 = arith.constant 16 : index
    %c112_70 = arith.constant 112 : index
    %85 = vector.load %arg9[%c16_69, %c112_70] : memref<48x512xf32, #tpu.memory_space<vmem>>, vector<16x256xf32>
    %c16_71 = arith.constant 16 : index
    %c0_72 = arith.constant 0 : index
    %86 = vector.load %arg10[%c16_71, %c0_72] : memref<144x256xf32, #tpu.memory_space<vmem>>, vector<16x256xf32>
    tpu.vector_store %arg10[%c16_71, %c0_72], %85 {strides = array<i32>} : memref<144x256xf32, #tpu.memory_space<vmem>>, vector<16x256xf32>,
    %c32_73 = arith.constant 32 : index
    %c112_74 = arith.constant 112 : index
    %87 = vector.load %arg9[%c32_73, %c112_74] : memref<48x512xf32, #tpu.memory_space<vmem>>, vector<16x256xf32>
    %c32_75 = arith.constant 32 : index
    %c0_76 = arith.constant 0 : index
    %88 = vector.load %arg10[%c32_75, %c0_76] : memref<144x256xf32, #tpu.memory_space<vmem>>, vector<16x256xf32>
    tpu.vector_store %arg10[%c32_75, %c0_76], %87 {strides = array<i32>} : memref<144x256xf32, #tpu.memory_space<vmem>>, vector<16x256xf32>,
    %c0_77 = arith.constant 0 : index
    %c128_78 = arith.constant 128 : index
    %89 = vector.load %arg9[%c0_77, %c128_78] : memref<48x512xf32, #tpu.memory_space<vmem>>, vector<16x256xf32>
    %c48_79 = arith.constant 48 : index
    %c0_80 = arith.constant 0 : index
    %90 = vector.load %arg10[%c48_79, %c0_80] : memref<144x256xf32, #tpu.memory_space<vmem>>, vector<16x256xf32>
    tpu.vector_store %arg10[%c48_79, %c0_80], %89 {strides = array<i32>} : memref<144x256xf32, #tpu.memory_space<vmem>>, vector<16x256xf32>,
    %c16_81 = arith.constant 16 : index
    %c128_82 = arith.constant 128 : index
    %91 = vector.load %arg9[%c16_81, %c128_82] : memref<48x512xf32, #tpu.memory_space<vmem>>, vector<16x256xf32>
    %c64_83 = arith.constant 64 : index
    %c0_84 = arith.constant 0 : index
    %92 = vector.load %arg10[%c64_83, %c0_84] : memref<144x256xf32, #tpu.memory_space<vmem>>, vector<16x256xf32>
    tpu.vector_store %arg10[%c64_83, %c0_84], %91 {strides = array<i32>} : memref<144x256xf32, #tpu.memory_space<vmem>>, vector<16x256xf32>,
    %c32_85 = arith.constant 32 : index
    %c128_86 = arith.constant 128 : index
    %93 = vector.load %arg9[%c32_85, %c128_86] : memref<48x512xf32, #tpu.memory_space<vmem>>, vector<16x256xf32>
    %c80_87 = arith.constant 80 : index
    %c0_88 = arith.constant 0 : index
    %94 = vector.load %arg10[%c80_87, %c0_88] : memref<144x256xf32, #tpu.memory_space<vmem>>, vector<16x256xf32>
    tpu.vector_store %arg10[%c80_87, %c0_88], %93 {strides = array<i32>} : memref<144x256xf32, #tpu.memory_space<vmem>>, vector<16x256xf32>,
    %c0_89 = arith.constant 0 : index
    %c144_90 = arith.constant 144 : index
    %95 = vector.load %arg9[%c0_89, %c144_90] : memref<48x512xf32, #tpu.memory_space<vmem>>, vector<16x256xf32>
    %c96_91 = arith.constant 96 : index
    %c0_92 = arith.constant 0 : index
    %96 = vector.load %arg10[%c96_91, %c0_92] : memref<144x256xf32, #tpu.memory_space<vmem>>, vector<16x256xf32>
    tpu.vector_store %arg10[%c96_91, %c0_92], %95 {strides = array<i32>} : memref<144x256xf32, #tpu.memory_space<vmem>>, vector<16x256xf32>,
    %c16_93 = arith.constant 16 : index
    %c144_94 = arith.constant 144 : index
    %97 = vector.load %arg9[%c16_93, %c144_94] : memref<48x512xf32, #tpu.memory_space<vmem>>, vector<16x256xf32>
    %c112_95 = arith.constant 112 : index
    %c0_96 = arith.constant 0 : index
    %98 = vector.load %arg10[%c112_95, %c0_96] : memref<144x256xf32, #tpu.memory_space<vmem>>, vector<16x256xf32>
    tpu.vector_store %arg10[%c112_95, %c0_96], %97 {strides = array<i32>} : memref<144x256xf32, #tpu.memory_space<vmem>>, vector<16x256xf32>,
    %c32_97 = arith.constant 32 : index
    %c144_98 = arith.constant 144 : index
    %99 = vector.load %arg9[%c32_97, %c144_98] : memref<48x512xf32, #tpu.memory_space<vmem>>, vector<16x256xf32>
    %c128_99 = arith.constant 128 : index
    %c0_100 = arith.constant 0 : index
    %100 = vector.load %arg10[%c128_99, %c0_100] : memref<144x256xf32, #tpu.memory_space<vmem>>, vector<16x256xf32>
    tpu.vector_store %arg10[%c128_99, %c0_100], %99 {strides = array<i32>} : memref<144x256xf32, #tpu.memory_space<vmem>>, vector<16x256xf32>,
    %c0_101 = arith.constant 0 : index
    %c0_102 = arith.constant 0 : index
    %101 = vector.load %arg4[%c0_101, %c0_102] : memref<16x144xf32, #tpu.memory_space<vmem>>, vector<16x144xf32>
    %c0_103 = arith.constant 0 : index
    %c0_104 = arith.constant 0 : index
    %102 = vector.load %arg10[%c0_103, %c0_104] : memref<144x256xf32, #tpu.memory_space<vmem>>, vector<144x256xf32>
    %cst_105 = arith.constant dense<0.000000e+00> : vector<16x256xf32>
    %103 = tpu.matmul %101, %102, %cst_105 {dimension_numbers = #tpu.dot_dimension_numbers<[1], [0], [0], [1], [0, 0, 1, 1], [], []>} : vector<16x144xf32>, vector<144x256xf32>, vector<16x256xf32> -> vector<16x256xf32>
    %104 = vector.extract_strided_slice %30 {offsets = [2, 0, 0], sizes = [1, 16, 1], strides = [1, 1, 1]} : vector<3x16x1xf32> to vector<1x16x1xf32>
    %105 = vector.shape_cast %104 : vector<1x16x1xf32> to vector<16x1xf32>
    %106 = vector.broadcast %105 : vector<16x1xf32> to vector<16x256xf32>
    %107 = arith.addf %103, %106 : vector<16x256xf32>
    %108 = arith.addf %107, %73 : vector<16x256xf32>
    %cst_106 = arith.constant 0.000000e+00 : f32
    %109 = vector.broadcast %cst_106 : f32 to vector<16x256xf32>
    %110 = arith.maximumf %108, %109 : vector<16x256xf32>
    %c1_i32_107 = arith.constant 1 : i32
    %111 = tpu.dynamic_rotate %110 by %c1_i32_107 dim 1 : vector<16x256xf32>, i32 -> vector<16x256xf32>
    %112 = vector.broadcast %23 : vector<1x256xf32> to vector<16x256xf32>
    %113 = arith.mulf %111, %112 : vector<16x256xf32>
    %c255_i32_108 = arith.constant 255 : i32
    %114 = tpu.dynamic_rotate %110 by %c255_i32_108 dim 1 : vector<16x256xf32>, i32 -> vector<16x256xf32>
    %115 = vector.broadcast %27 : vector<1x256xf32> to vector<16x256xf32>
    %116 = arith.mulf %114, %115 : vector<16x256xf32>
    %c0_109 = arith.constant 0 : index
    %c128_110 = arith.constant 128 : index
    %117 = vector.load %arg9[%c0_109, %c128_110] : memref<48x512xf32, #tpu.memory_space<vmem>>, vector<16x256xf32>
    tpu.vector_store %arg9[%c0_109, %c128_110], %113 {strides = array<i32>} : memref<48x512xf32, #tpu.memory_space<vmem>>, vector<16x256xf32>,
    %c16_111 = arith.constant 16 : index
    %c128_112 = arith.constant 128 : index
    %118 = vector.load %arg9[%c16_111, %c128_112] : memref<48x512xf32, #tpu.memory_space<vmem>>, vector<16x256xf32>
    tpu.vector_store %arg9[%c16_111, %c128_112], %110 {strides = array<i32>} : memref<48x512xf32, #tpu.memory_space<vmem>>, vector<16x256xf32>,
    %c32_113 = arith.constant 32 : index
    %c128_114 = arith.constant 128 : index
    %119 = vector.load %arg9[%c32_113, %c128_114] : memref<48x512xf32, #tpu.memory_space<vmem>>, vector<16x256xf32>
    tpu.vector_store %arg9[%c32_113, %c128_114], %116 {strides = array<i32>} : memref<48x512xf32, #tpu.memory_space<vmem>>, vector<16x256xf32>,
    %c0_115 = arith.constant 0 : index
    %c112_116 = arith.constant 112 : index
    %120 = vector.load %arg9[%c0_115, %c112_116] : memref<48x512xf32, #tpu.memory_space<vmem>>, vector<16x256xf32>
    %c0_117 = arith.constant 0 : index
    %c0_118 = arith.constant 0 : index
    %121 = vector.load %arg10[%c0_117, %c0_118] : memref<144x256xf32, #tpu.memory_space<vmem>>, vector<16x256xf32>
    tpu.vector_store %arg10[%c0_117, %c0_118], %120 {strides = array<i32>} : memref<144x256xf32, #tpu.memory_space<vmem>>, vector<16x256xf32>,
    %c16_119 = arith.constant 16 : index
    %c112_120 = arith.constant 112 : index
    %122 = vector.load %arg9[%c16_119, %c112_120] : memref<48x512xf32, #tpu.memory_space<vmem>>, vector<16x256xf32>
    %c16_121 = arith.constant 16 : index
    %c0_122 = arith.constant 0 : index
    %123 = vector.load %arg10[%c16_121, %c0_122] : memref<144x256xf32, #tpu.memory_space<vmem>>, vector<16x256xf32>
    tpu.vector_store %arg10[%c16_121, %c0_122], %122 {strides = array<i32>} : memref<144x256xf32, #tpu.memory_space<vmem>>, vector<16x256xf32>,
    %c32_123 = arith.constant 32 : index
    %c112_124 = arith.constant 112 : index
    %124 = vector.load %arg9[%c32_123, %c112_124] : memref<48x512xf32, #tpu.memory_space<vmem>>, vector<16x256xf32>
    %c32_125 = arith.constant 32 : index
    %c0_126 = arith.constant 0 : index
    %125 = vector.load %arg10[%c32_125, %c0_126] : memref<144x256xf32, #tpu.memory_space<vmem>>, vector<16x256xf32>
    tpu.vector_store %arg10[%c32_125, %c0_126], %124 {strides = array<i32>} : memref<144x256xf32, #tpu.memory_space<vmem>>, vector<16x256xf32>,
    %c0_127 = arith.constant 0 : index
    %c128_128 = arith.constant 128 : index
    %126 = vector.load %arg9[%c0_127, %c128_128] : memref<48x512xf32, #tpu.memory_space<vmem>>, vector<16x256xf32>
    %c48_129 = arith.constant 48 : index
    %c0_130 = arith.constant 0 : index
    %127 = vector.load %arg10[%c48_129, %c0_130] : memref<144x256xf32, #tpu.memory_space<vmem>>, vector<16x256xf32>
    tpu.vector_store %arg10[%c48_129, %c0_130], %126 {strides = array<i32>} : memref<144x256xf32, #tpu.memory_space<vmem>>, vector<16x256xf32>,
    %c16_131 = arith.constant 16 : index
    %c128_132 = arith.constant 128 : index
    %128 = vector.load %arg9[%c16_131, %c128_132] : memref<48x512xf32, #tpu.memory_space<vmem>>, vector<16x256xf32>
    %c64_133 = arith.constant 64 : index
    %c0_134 = arith.constant 0 : index
    %129 = vector.load %arg10[%c64_133, %c0_134] : memref<144x256xf32, #tpu.memory_space<vmem>>, vector<16x256xf32>
    tpu.vector_store %arg10[%c64_133, %c0_134], %128 {strides = array<i32>} : memref<144x256xf32, #tpu.memory_space<vmem>>, vector<16x256xf32>,
    %c32_135 = arith.constant 32 : index
    %c128_136 = arith.constant 128 : index
    %130 = vector.load %arg9[%c32_135, %c128_136] : memref<48x512xf32, #tpu.memory_space<vmem>>, vector<16x256xf32>
    %c80_137 = arith.constant 80 : index
    %c0_138 = arith.constant 0 : index
    %131 = vector.load %arg10[%c80_137, %c0_138] : memref<144x256xf32, #tpu.memory_space<vmem>>, vector<16x256xf32>
    tpu.vector_store %arg10[%c80_137, %c0_138], %130 {strides = array<i32>} : memref<144x256xf32, #tpu.memory_space<vmem>>, vector<16x256xf32>,
    %c0_139 = arith.constant 0 : index
    %c144_140 = arith.constant 144 : index
    %132 = vector.load %arg9[%c0_139, %c144_140] : memref<48x512xf32, #tpu.memory_space<vmem>>, vector<16x256xf32>
    %c96_141 = arith.constant 96 : index
    %c0_142 = arith.constant 0 : index
    %133 = vector.load %arg10[%c96_141, %c0_142] : memref<144x256xf32, #tpu.memory_space<vmem>>, vector<16x256xf32>
    tpu.vector_store %arg10[%c96_141, %c0_142], %132 {strides = array<i32>} : memref<144x256xf32, #tpu.memory_space<vmem>>, vector<16x256xf32>,
    %c16_143 = arith.constant 16 : index
    %c144_144 = arith.constant 144 : index
    %134 = vector.load %arg9[%c16_143, %c144_144] : memref<48x512xf32, #tpu.memory_space<vmem>>, vector<16x256xf32>
    %c112_145 = arith.constant 112 : index
    %c0_146 = arith.constant 0 : index
    %135 = vector.load %arg10[%c112_145, %c0_146] : memref<144x256xf32, #tpu.memory_space<vmem>>, vector<16x256xf32>
    tpu.vector_store %arg10[%c112_145, %c0_146], %134 {strides = array<i32>} : memref<144x256xf32, #tpu.memory_space<vmem>>, vector<16x256xf32>,
    %c32_147 = arith.constant 32 : index
    %c144_148 = arith.constant 144 : index
    %136 = vector.load %arg9[%c32_147, %c144_148] : memref<48x512xf32, #tpu.memory_space<vmem>>, vector<16x256xf32>
    %c128_149 = arith.constant 128 : index
    %c0_150 = arith.constant 0 : index
    %137 = vector.load %arg10[%c128_149, %c0_150] : memref<144x256xf32, #tpu.memory_space<vmem>>, vector<16x256xf32>
    tpu.vector_store %arg10[%c128_149, %c0_150], %136 {strides = array<i32>} : memref<144x256xf32, #tpu.memory_space<vmem>>, vector<16x256xf32>,
    %c0_151 = arith.constant 0 : index
    %c0_152 = arith.constant 0 : index
    %138 = vector.load %arg5[%c0_151, %c0_152] : memref<4x144xf32, #tpu.memory_space<vmem>>, vector<4x144xf32>
    %c0_153 = arith.constant 0 : index
    %c0_154 = arith.constant 0 : index
    %139 = vector.load %arg10[%c0_153, %c0_154] : memref<144x256xf32, #tpu.memory_space<vmem>>, vector<144x256xf32>
    %cst_155 = arith.constant dense<0.000000e+00> : vector<4x256xf32>
    %140 = tpu.matmul %138, %139, %cst_155 {dimension_numbers = #tpu.dot_dimension_numbers<[1], [0], [0], [1], [0, 0, 1, 1], [], []>} : vector<4x144xf32>, vector<144x256xf32>, vector<4x256xf32> -> vector<4x256xf32>
    %c0_156 = arith.constant 0 : index
    %c0_157 = arith.constant 0 : index
    %141 = vector.load %arg7[%c0_156, %c0_157] : memref<4x1xf32, #tpu.memory_space<vmem>>, vector<4x1xf32>
    %142 = vector.broadcast %141 : vector<4x1xf32> to vector<4x256xf32>
    %143 = arith.addf %140, %142 : vector<4x256xf32>
    %c0_158 = arith.constant 0 : index
    %c0_159 = arith.constant 0 : index
    %c0_160 = arith.constant 0 : index
    %144 = vector.load %arg8[%c0_158, %c0_159, %c0_160] : memref<1x4x256xf32, #tpu.memory_space<vmem>>, vector<1x4x256xf32>
    %145 = vector.shape_cast %144 : vector<1x4x256xf32> to vector<4x256xf32>
    %146 = vector.shape_cast %143 : vector<4x256xf32> to vector<1x4x256xf32>
    tpu.vector_store %arg8[%c0_158, %c0_159, %c0_160], %146 {strides = array<i32>} : memref<1x4x256xf32, #tpu.memory_space<vmem>>, vector<1x4x256xf32>,
    return
  }
  func.func @transform_0(%arg0: i32) -> (i32, i32, i32) {
    %c0_i32 = arith.constant 0 : i32
    %c0_i32_0 = arith.constant 0 : i32
    %c0_i32_1 = arith.constant 0 : i32
    return %arg0, %c0_i32, %c0_i32_0 : i32, i32, i32
  }
  func.func @transform_1(%arg0: i32) -> (i32, i32) {
    %c0_i32 = arith.constant 0 : i32
    %c0_i32_0 = arith.constant 0 : i32
    %c0_i32_1 = arith.constant 0 : i32
    return %c0_i32, %c0_i32_0 : i32, i32
  }
  func.func @transform_2(%arg0: i32) -> (i32, i32) {
    %c0_i32 = arith.constant 0 : i32
    %c0_i32_0 = arith.constant 0 : i32
    %c0_i32_1 = arith.constant 0 : i32
    return %c0_i32, %c0_i32_0 : i32, i32
  }
  func.func @transform_3(%arg0: i32) -> (i32, i32) {
    %c0_i32 = arith.constant 0 : i32
    %c0_i32_0 = arith.constant 0 : i32
    %c0_i32_1 = arith.constant 0 : i32
    return %c0_i32, %c0_i32_0 : i32, i32
  }
  func.func @transform_4(%arg0: i32) -> (i32, i32) {
    %c0_i32 = arith.constant 0 : i32
    %c0_i32_0 = arith.constant 0 : i32
    %c0_i32_1 = arith.constant 0 : i32
    return %c0_i32, %c0_i32_0 : i32, i32
  }
  func.func @transform_5(%arg0: i32) -> (i32, i32, i32) {
    %c0_i32 = arith.constant 0 : i32
    %c0_i32_0 = arith.constant 0 : i32
    %c0_i32_1 = arith.constant 0 : i32
    %c0_i32_2 = arith.constant 0 : i32
    return %c0_i32, %c0_i32_0, %c0_i32_1 : i32, i32, i32
  }
  func.func @transform_6(%arg0: i32) -> (i32, i32) {
    %c0_i32 = arith.constant 0 : i32
    %c0_i32_0 = arith.constant 0 : i32
    %c0_i32_1 = arith.constant 0 : i32
    return %c0_i32, %c0_i32_0 : i32, i32
  }
  func.func @transform_7(%arg0: i32) -> (i32, i32, i32) {
    %c0_i32 = arith.constant 0 : i32
    %c0_i32_0 = arith.constant 0 : i32
    %c0_i32_1 = arith.constant 0 : i32
    return %arg0, %c0_i32, %c0_i32_0 : i32, i32, i32
  }
}

</mosaic_0001>

<bundles_post_ra>
// kernel: tpu_custom_call.1
= control target key start
LH: loop header
LB: loop body
LE: loop exit
PB: predicated region body
PF: predicated region fallthrough
CT: control target
= control target key end

     0   :  { %12 = vsyncpa [#allocation5], 0  ;;  %s3381_s0 = inlined_call_operand.hbm [shape: f32[2,16,256], index: 0, kind: input, shape index: {}]   ;;  %s3382_s1 = inlined_call_operand.vmem [shape: f32[16,144], index: 1, kind: input, shape index: {}]   ;;  %s3383_s2 = inlined_call_operand.hbm [shape: f32[16,16], index: 2, kind: input, shape index: {}]   ;;  %s3384_s3 = inlined_call_operand.vmem [shape: f32[16,144], index: 3, kind: input, shape index: {}]   ;;  %s3385_s4 = inlined_call_operand.hbm [shape: f32[4,144], index: 4, kind: input, shape index: {}]   ;;  %s3386_s5 = inlined_call_operand.vmem [shape: f32[3,16,1], index: 5, kind: input, shape index: {}]   ;;  %s3387_s6 = inlined_call_operand.vmem [shape: f32[4,1], index: 6, kind: input, shape index: {}]   ;;  %s3388_s7 = inlined_call_operand.hbm [shape: f32[2,4,256], index: 7, kind: output, shape index: {}]  }
   0x1   :  { %14 = vsyncpa [#allocation5 + $0x1], 0 }
   0x2   :  { %15 = vsyncpa [#allocation8], 0 }
   0x3   :  { %16 = vsyncpa [#allocation6], 0 }
   0x4   :  { %18 = vsyncpa [#allocation6 + $0x1], 0  ;;  %s2562_s24 = smov 0   ;;  %s2564_s25 = smov 0  }
   0x5   :  { %s2566_s26 = smov 0   ;;  %s2568_s27 = smov 0  }
   0x6 LB: > { %s2583_s28 = sadd.s32 4294967295, %s2506_s27   ;;  %s1845_s29 = sadd.s32 4294967294, %s2506_s27   ;;  %s2506_s27 = sphi %s2568_s27, %s3408_s27   ;;  %s2502_s26 = sphi %s2566_s26, %s3407_s26   ;;  %s2498_s25 = sphi %s2564_s25, %s3406_s25   ;;  %s2494_s24 = sphi %s2562_s24, %s3405_s24  }
   0x7   : > { %p44_p0 = scmp.ne.s32.totalorder %s2498_s25, %s2494_s24  ;;  %p3389_p1 = scmp.eq.s32.totalorder %s2583_s28, 0 }
   0x8   : > { %p200_p3 = scmp.eq.s32.totalorder %s1845_s29, 1  ;;  %p1846_p5 = scmp.ge.s32.totalorder %s2506_s27, 1 }
   0x9   : > { %p2592_p4 = por %p3389_p1, %p44_p0  ;;  %p207_p7 = scmp.lt.s32.totalorder %s2506_s27, 3 }
   0xa   : > { %p2597_p6 = por %p200_p3, %p44_p0  ;;  %s2508_s10 = smov [#allocation7]  }
   0xb   : > { %s3392_s30 = scalar_select %p2592_p4, 1, 0 }
   0xc   : > { %s3393_s8 = scalar_select %p2597_p6, 1, 0 }
   0xd   : > { %p2602_p8 = pnand %p1846_p5, %p207_p7  ;;  %s222_s11 = sshll.u32 %s2508_s10, 4  ;;  %s2606_s11 = int_to_ptr.vmem [resolvable:$true] %s222_s11 }
   0xe   : > { %s2509_s13 = smov [#allocation9]   ;;  %s2350_s17 = scalar_lea.hbm %s3383_s2, 256 }
   0xf   : > { %p2012_p9 = pneg %p2602_p8  ;;  %s239_s14 = sshll.u32 %s2509_s13, 4  ;;  %s2617_s14 = int_to_ptr.vmem [resolvable:$true] %s239_s14 }
  0x10   : > { %p2351_p12 = scmp.ne.s32.totalorder %s3383_s2, %s2350_s17  ;;  %p2357_p5 = scmp.lt.u32.totalorder %s2350_s17, %s3383_s2 }
  0x11   : > { %p2613_p11 = pnand %p2012_p9, %p3389_p1 }
  0x13   : > { %p2352_p13 = pneg %p2613_p11 }
  0x15   : > { %p2353_p0 = pnand %p2352_p13, %p2351_p12 }
  0x17   : > { %p2354_p3 = pneg %p2353_p0 }
  0x19   : > { %p2359_p7 = pnand %p2357_p5, %p2354_p3 }
  0x1b   : > { %2362 = shalt.err (!%p2359_p7)
}
  0x1c   : > { %s2363_s22 = scalar_lea.vmem %s2606_s11, 256  ;;  %p2371_p2 = scmp.lt.s32.totalorder %s2606_s11, %s2606_s11 }
  0x1d   : > { %p2364_p9 = scmp.ne.s32.totalorder %s2606_s11, %s2363_s22  ;;  %p2372_p12 = scmp.lt.s32.totalorder %s2363_s22, %s2363_s22 }
  0x1f   : > { %p2366_p10 = pnand %p2364_p9, %p2352_p13  ;;  %p2373_p0 = por %p2372_p12, %p2371_p2 }
  0x21   : > { %p2367_p1 = pneg %p2366_p10 }
  0x23   : > { %p2374_p6 = pnand %p2373_p0, %p2367_p1 }
  0x25   : > { %2377 = shalt.err (!%p2374_p6)
}
  0x26   : > { %s2510_s23 = smov 128   ;;  %s2511_s29 = smov 8  }
  0x27   : > { %2015 = dma.hbm_to_vmem [thread:$0]  (!%p2613_p11), %s3383_s2, 256, %s2606_s11, [#allocation8], %s2510_s23, %s2510_s23, %s2511_s29  }
  0x28   : > { %s2378_s17 = scalar_lea.hbm %s3385_s4, 128 }
  0x29   : > { %p2379_p2 = scmp.ne.s32.totalorder %s3385_s4, %s2378_s17  ;;  %p2385_p10 = scmp.lt.u32.totalorder %s2378_s17, %s3385_s4 }
  0x2b   : > { %p2381_p1 = pnand %p2379_p2, %p2352_p13 }
  0x2d   : > { %p2382_p6 = pneg %p2381_p1 }
  0x2f   : > { %p2387_p3 = pnand %p2385_p10, %p2382_p6 }
  0x31   : > { %2390 = shalt.err (!%p2387_p3)
}
  0x32   : > { %s2391_s11 = scalar_lea.vmem %s2617_s14, 128  ;;  %p2399_p12 = scmp.lt.s32.totalorder %s2617_s14, %s2617_s14 }
  0x33   : > { %p2392_p5 = scmp.ne.s32.totalorder %s2617_s14, %s2391_s11  ;;  %p2400_p0 = scmp.lt.s32.totalorder %s2391_s11, %s2391_s11 }
  0x35   : > { %p2394_p7 = pnand %p2392_p5, %p2352_p13  ;;  %p2401_p2 = por %p2400_p0, %p2399_p12 }
  0x37   : > { %p2395_p9 = pneg %p2394_p7 }
  0x39   : > { %p2402_p1 = pnand %p2401_p2, %p2395_p9 }
  0x3b   : > { %2405 = shalt.err (!%p2402_p1)
}
  0x3c   : > { %2018 = dma.hbm_to_vmem [thread:$0]  (!%p2613_p11), %s3385_s4, 128, %s2617_s14, [#allocation8]  }
  0x3d   : > { %s2672_s29 = sadd.s32 1, %s2506_s27   ;;  %s31_s12 = sadd.s32 1, %s2502_s26 }
  0x3e   : > { %s28_s10 = ssub.s32 %s2506_s27, %s2672_s29  ;;  %p38_p13 = scmp.ne.s32.totalorder %s2502_s26, %s2498_s25 }
  0x3f   : > { %p29_p6 = scmp.eq.s32.totalorder %s28_s10, 0  ;;  %p39_p10 = scmp.eq.s32.totalorder %s2506_s27, 0 }
  0x40   : > { %p3396_p3 = scmp.eq.s32.totalorder %s2583_s28, 1  ;;  %p2029_p7 = scmp.lt.s32.totalorder %s2506_s27, 2 }
  0x41   : > { %s2688_s15 = scalar_select %p29_p6, %s2502_s26, %s31_s12  }
  0x42   : > { %p2682_p5 = por %p3396_p3, %p38_p13  ;;  %p40_p9 = por %p39_p10, %p38_p13 }
  0x43   : > { %s256_s16 = sand.u32 1, %s2502_s26   ;;  %s1874_s14 = sshll.u32 %s2506_s27, 9 }
  0x44   : > { %s3397_s13 = scalar_select %p2682_p5, 1, 0 }
  0x45   : > { %s1850_s17 = sshll.u32 %s256_s16, 5  ;;  %s2695_s20 = scalar_lea.hbm %s3381_s0, %s1874_s14 }
  0x46   : > { %s260_s21 = scalar_lea.vmem [#allocation4], %s1850_s17  ;;  %p2699_p11 = pnand %p2029_p7, %p40_p9 }
  0x47   : > { %s267_s11 = sshll.u32 %s260_s21, 4  ;;  %s2703_s23 = scalar_lea.sflag [#allocation5], %s256_s16  ;;  %s2697_s11 = int_to_ptr.vmem [resolvable:$true] %s267_s11 }
  0x48   : > { %s2406_s12 = scalar_lea.hbm %s2695_s20, 512  ;;  %p2408_p0 = pneg %p2699_p11 }
  0x49   : > { %p2407_p12 = scmp.ne.s32.totalorder %s2695_s20, %s2406_s12  ;;  %s2411_s14 = scalar_lea.hbm %s3381_s0, 1024 }
  0x4a   : > { %p2412_p13 = scmp.lt.u32.totalorder %s2695_s20, %s3381_s0  ;;  %p2413_p6 = scmp.lt.u32.totalorder %s2411_s14, %s2406_s12 }
  0x4b   : > { %p2409_p2 = pnand %p2408_p0, %p2407_p12  ;;  %p2415_p3 = scmp.lt.u32.totalorder %s2406_s12, %s2695_s20 }
  0x4c   : > { %p2414_p10 = por %p2413_p6, %p2412_p13 }
  0x4d   : > { %p2410_p1 = pneg %p2409_p2 }
  0x4e   : > { %p2416_p7 = por %p2415_p3, %p2414_p10 }
  0x50   : > { %p2417_p9 = pnand %p2416_p7, %p2410_p1 }
  0x52   : > { %2420 = shalt.err (!%p2417_p9)
}
  0x53   : > { %s2421_s16 = scalar_lea.vmem %s2697_s11, 512  ;;  %s2512_s21 = smov [#allocation4]  }
  0x54   : > { %p2422_p12 = scmp.ne.s32.totalorder %s2697_s11, %s2421_s16  ;;  %s2426_s10 = sshll.u32 %s2512_s21, 4  ;;  %s2427_s10 = int_to_ptr.vmem [resolvable:$false] %s2426_s10 }
  0x55   : > { %s2428_s17 = scalar_lea.vmem %s2427_s10, 1024  ;;  %p2429_p4 = scmp.lt.s32.totalorder %s2697_s11, %s2427_s10 }
  0x56   : > { %p2424_p2 = pnand %p2422_p12, %p2408_p0  ;;  %p2430_p13 = scmp.lt.s32.totalorder %s2428_s17, %s2421_s16 }
  0x58   : > { %p2425_p5 = pneg %p2424_p2  ;;  %p2431_p6 = por %p2430_p13, %p2429_p4 }
  0x5a   : > { %p2432_p10 = pnand %p2431_p6, %p2425_p5 }
  0x5c   : > { %2435 = shalt.err (!%p2432_p10)
}
  0x5d   : > { %s2513_s12 = smov 256   ;;  %s2514_s14 = smov 16  }
  0x5e   : > { %2022 = dma.hbm_to_vmem [thread:$0]  (!%p2699_p11), %s2695_s20, 512, %s2697_s11, %s2703_s23, %s2513_s12, %s2513_s12, %s2514_s14  }
  0x5f   : > { %279 = sbr.rel (%p2602_p8) target bundleno = 1622 (0x656), region = 48  ;;  %s2734_s18 = sand.u32 (!%p2602_p8), 1, %s2498_s25  }
  0x60   : > { %s1854_s19 = sshll.u32 (!%p2602_p8), %s2734_s18, 5  ;;  %s282_s16 = scalar_lea.sflag (!%p2602_p8), [#allocation5], %s2734_s18 }
  0x61   : > { %s285_s21 = scalar_lea.vmem (!%p2602_p8), [#allocation4], %s1854_s19  ;;  %p3399_p4 = scmp.ne.s32.totalorder (!%p2602_p8), %s3392_s30, 0 }
  0x66   : > { %2481 = dma.done.wait (%p3399_p4), %s282_s16, 512  }
  0x67   : > { %2483 = vsyncadd (%p3399_p4), %s282_s16, 4294966784  ;;  %p3400_p5 = scmp.eq.s32.totalorder %s2583_s28, 0 }
  0x69   : > { %2485 = dma.done.wait (%p3400_p5), [#allocation8], 384   ;;  %p3401_p11 = pmov %p3400_p5 }
  0x6a   : > { %v2515_v0 = vmov 0.0   ;;  %v2747_v1 = vld [vmem:[%s285_s21 + $0x8] sm:$0xff]  ;;  %v2749_v2 = vld [vmem:[%s285_s21] sm:$0xff]  ;;  %s2516_s9 = smov 1   ;;  %v2755_v3 = vld [vmem:[%s285_s21 + $0x18] sm:$0xff]  ;;  %s2517_s30 = smov 127   ;;  %v336_v6 = vlaneseq }
  0x6b   : > { %2487 = vsyncadd (%p3401_p11), [#allocation8], 4294966912  ;;  %896 = vmatprep.mubr.f32.mxu1 %v2515_v0  ;;  %389 = vrot.lane.b32.xlu1 %v2747_v1, %s2516_s9  ;;  %v2757_v4 = vld [vmem:[%s285_s21 + $0x10] sm:$0xff]  ;;  %v2082_v5 = vpack.i.bf16 %v2747_v1, %v2749_v2  ;;  %s2518_s20 = smov 16   ;;  %v2127_v46 = vpack.i.bf16 %v2515_v0, %v2755_v3  ;;  %v2863_v49 = vpack.c.bf16 %v2755_v3, %v2747_v1  ;;  %s2519_s11 = smov 112   ;;  %vm455_vm6 = vcmask 130048  }
  0x6c   : > { %385 = vrot.lane.b32.xlu0 %v2749_v2, %s2516_s9  ;;  %v2776_v7 = vand.u32 127, %v336_v6  ;;  %v2092_v26 = vpack.i.bf16 %v2755_v3, %v2757_v4  ;;  %v2122_v50 = vpack.i.bf16 %v2515_v0, %v2747_v1  ;;  %v2872_v51 = vpack.c.bf16 %v2757_v4, %v2749_v2  ;;  %v674_v59 = vld [vmem:[%s3382_s1 + $0x8] sm:$0xff]  ;;  %v379_v60 = vld [vmem:[%s3386_s5] sm:$0xff]  ;;  %s1742_s19 = scalar_lea.sflag [#allocation6], %s2734_s18  ;;  %p3402_p0 = scmp.ne.s32.totalorder %s3397_s13, 0 }
  0x6d   : > { %1913 = vmatprep.subr.bf16.mxu1 %v2863_v49  ;;  %v2142_v55 = vpack.i.bf16 %v2757_v4, %v2749_v2  ;;  %1862 = vmatprep.mubr.msk.f32.mxu0 %vm455_vm6, %v674_v59  ;;  %v380_v61 = vld [vmem:[%s3386_s5 + $0x8] sm:$0xff]  ;;  %v2520_v62 = vmov 0   ;;  %vm588_vm7 = vcmask 916480  }
  0x6e   : > { %v338_v8 = vadd.s32 128, %v2776_v7  ;;  %v343_v9 = vand.u32 15, %v2776_v7  ;;  %vm393_vm2 = vcmp.lt.s32.totalorder %v2776_v7, 1  ;;  %vm410_vm5 = vcmp.lt.s32.totalorder %v2776_v7, 127  ;;  %1915 = vmatpush1.bf16.msra.mxu1 %v2872_v51  ;;  %2167 = vset.pattern.permute.xlu0 %v2520_v62 }
  0x6f   : > { %391 = vrot.lane.b32.xlu1 %v2755_v3, %s2516_s9 }
  0x70   : > { %387 = vrot.lane.b32.xlu0 %v2757_v4, %s2516_s9  ;;  %v350_v10 = vand.u32 15, %v338_v8  ;;  %vm363_vm0 = vcmp.gt.s32.totalorder %v343_v9, 0  ;;  %vm369_vm3 = vcmp.lt.s32.totalorder %v343_v9, 15  ;;  %2168 = vset.pattern.permute.xlu1 %v2520_v62 }
  0x71   : > { %v2782_v11 = vsel %vm363_vm0, 1.0, %v2515_v0  ;;  %v2822_v32 = vsel %vm369_vm3, 1.0, %v2515_v0 }
  0x72   : > { %vm364_vm1 = vcmp.gt.s32.totalorder %v350_v10, 0  ;;  %vm370_vm4 = vcmp.lt.s32.totalorder %v350_v10, 15 }
  0x73   : > { %404 = vrot.lane.b32.xlu1 %v2757_v4, %s2517_s30  ;;  %v2785_v12 = vsel %vm364_vm1, 1.0, %v2515_v0  ;;  %v2825_v33 = vsel %vm370_vm4, 1.0, %v2515_v0 }
  0x74   : > { %402 = vrot.lane.b32.xlu0 %v2749_v2, %s2517_s30 }
  0x77   : > { %408 = vrot.lane.b32.xlu1 %v2755_v3, %s2517_s30 }
  0x78   : > { %406 = vrot.lane.b32.xlu0 %v2747_v1, %s2517_s30 }
  0x7b   : > { %2083 = vrot.lane.b32.xlu1 %v2082_v5, %s2518_s20 }
  0x7c   : > { %2078 = vrot.lane.b32.xlu0 %v2515_v0, %s2518_s20 }
  0xdd   : > { %v390_v13 = vpop.permute.xlu1 %389 }
  0xde   : > { %v386_v14 = vpop.permute.xlu0 %385 }
  0xdf   : > { %v394_v15 = vsel %vm393_vm2, %v386_v14, %v390_v13  ;;  %v396_v16 = vsel %vm393_vm2, %v390_v13, %v386_v14 }
  0xe0   : > { %v2792_v17 = vmul.f32 %v2782_v11, %v396_v16  ;;  %v2795_v18 = vmul.f32 %v2785_v12, %v394_v15 }
  0xe1   : > { %v392_v19 = vpop.permute.xlu1 %391 }
  0xe2   : > { %v388_v20 = vpop.permute.xlu0 %387  ;;  %v2087_v21 = vpack.i.bf16 %v2795_v18, %v2792_v17  ;;  %v2132_v52 = vpack.i.bf16 %v2515_v0, %v2795_v18 }
  0xe3   : > { %v395_v22 = vsel %vm393_vm2, %v388_v20, %v392_v19  ;;  %v397_v23 = vsel %vm393_vm2, %v392_v19, %v388_v20 }
  0xe4   : > { %v2804_v24 = vmul.f32 %v2782_v11, %v397_v23  ;;  %v2807_v25 = vmul.f32 %v2785_v12, %v395_v22  ;;  %2088 = vrot.lane.b32.xlu0 %v2087_v21, %s2518_s20 }
  0xe5   : > { %v405_v27 = vpop.permute.xlu1 %404 }
  0xe6   : > { %v403_v28 = vpop.permute.xlu0 %402  ;;  %v2097_v29 = vpack.i.bf16 %v2807_v25, %v2804_v24  ;;  %v1888_v30 = vpack.c.bf16 %v2807_v25, %v2795_v18  ;;  %v1890_v31 = vpack.c.bf16 %v2804_v24, %v2792_v17  ;;  %v2147_v53 = vpack.i.bf16 %v2804_v24, %v2792_v17 }
  0xe7   : > { %v2137_v54 = vpack.i.bf16 %v2515_v0, %v2807_v25 }
  0xe8   : > { %2093 = vrot.lane.b32.xlu0 %v2092_v26, %s2518_s20  ;;  %2098 = vrot.lane.b32.xlu1 %v2097_v29, %s2518_s20 }
  0xe9   : > { %v409_v34 = vpop.permute.xlu1 %408 }
  0xea   : > { %v407_v35 = vpop.permute.xlu0 %406  ;;  %v412_v36 = vsel %vm410_vm5, %v405_v27, %v409_v34  ;;  %v414_v37 = vsel %vm410_vm5, %v409_v34, %v405_v27 }
  0xeb   : > { %v411_v38 = vsel %vm410_vm5, %v403_v28, %v407_v35  ;;  %v413_v39 = vsel %vm410_vm5, %v407_v35, %v403_v28  ;;  %v2836_v40 = vmul.f32 %v2822_v32, %v412_v36  ;;  %v2839_v41 = vmul.f32 %v2825_v33, %v414_v37 }
  0xec   : > { %v2842_v42 = vmul.f32 %v2822_v32, %v411_v38  ;;  %v2845_v43 = vmul.f32 %v2825_v33, %v413_v39  ;;  %2103 = vrot.lane.b32.xlu1 %v2515_v0, %s2518_s20 }
  0xed   : > { %v2112_v44 = vpack.i.bf16 %v2839_v41, %v2836_v40  ;;  %v2157_v58 = vpack.i.bf16 %v2515_v0, %v2839_v41  ;;  %v2084_v1 = vpop.permute.xlu1 %2083 }
  0xee   : > { %v2107_v45 = vpack.i.bf16 %v2845_v43, %v2842_v42  ;;  %v1896_v47 = vpack.c.bf16 %v2839_v41, %v2845_v43  ;;  %v1898_v48 = vpack.c.bf16 %v2836_v40, %v2842_v42  ;;  %v2152_v56 = vpack.i.bf16 %v2515_v0, %v2845_v43  ;;  %v2079_v63 = vpop.permute.xlu0 %2078 }
  0xef   : > { %v2162_v57 = vpack.i.bf16 %v2836_v40, %v2842_v42  ;;  %v2086_v3 = vunpack.i.h.bf16 %v2084_v1  ;;  %v2085_v4 = vunpack.i.l.bf16 %v2084_v1  ;;  %v2080_v8 = vunpack.i.l.bf16 %v2079_v63 }
  0xf0   : > { %2113 = vrot.lane.b32.xlu1 %v2112_v44, %s2518_s20  ;;  %2108 = vrot.lane.b32.xlu0 %v2107_v45, %s2518_s20  ;;  %v2081_v9 = vunpack.i.h.bf16 %v2079_v63 }
  0xf1   : > { %v493_v21 = vsel %vm455_vm6, %v2085_v4, %v2086_v3 }
  0xf4   : > { %2128 = vrot.lane.b32.xlu1 %v2127_v46, %s2519_s11  ;;  %2118 = vrot.lane.b32.xlu0 %v2515_v0, %s2518_s20 }
  0xf8   : > { %2133 = vrot.lane.b32.xlu1 %v2132_v52, %s2519_s11  ;;  %2123 = vrot.lane.b32.xlu0 %v2122_v50, %s2519_s11 }
  0xfc   : > { %2148 = vrot.lane.b32.xlu1 %v2147_v53, %s2519_s11  ;;  %2138 = vrot.lane.b32.xlu0 %v2137_v54, %s2519_s11 }
 0x100   : > { %2153 = vrot.lane.b32.xlu1 %v2152_v56, %s2519_s11  ;;  %2143 = vrot.lane.b32.xlu0 %v2142_v55, %s2519_s11 }
 0x104   : > { %2163 = vrot.lane.b32.xlu1 %v2162_v57, %s2519_s11  ;;  %2158 = vrot.lane.b32.xlu0 %v2157_v58, %s2519_s11 }
 0x108   : > { %715 = vperm.xlu0 %2167, %v379_v60   ;;  %720 = vperm.xlu1 %2168, %v380_v61  }
 0x156   : > { %v2089_v2 = vpop.permute.xlu0 %2088 }
 0x157   : > { %v2091_v5 = vunpack.i.h.bf16 %v2089_v2  ;;  %v2090_v6 = vunpack.i.l.bf16 %v2089_v2 }
 0x159   : > { %v457_v20 = vsel %vm455_vm6, %v2090_v6, %v2091_v5  ;;  %v456_v23 = vsel %vm455_vm6, %v2080_v8, %v2090_v6 }
 0x15a   : > { %v2099_v10 = vpop.permute.xlu1 %2098  ;;  %v2094_v13 = vpop.permute.xlu0 %2093 }
 0x15b   : > { %v2101_v14 = vunpack.i.h.bf16 %v2099_v10  ;;  %v2100_v15 = vunpack.i.l.bf16 %v2099_v10  ;;  %v2096_v16 = vunpack.i.h.bf16 %v2094_v13  ;;  %v2095_v19 = vunpack.i.l.bf16 %v2094_v13 }
 0x15d   : > { %v459_v22 = vsel %vm455_vm6, %v2100_v15, %v2101_v14  ;;  %v458_v26 = vsel %vm455_vm6, %v2081_v9, %v2100_v15  ;;  %v495_v27 = vsel %vm455_vm6, %v2095_v19, %v2096_v16 }
 0x15e   : > { %v2104_v28 = vpop.permute.xlu1 %2103  ;;  %v1876_v29 = vpack.c.bf16 %v459_v22, %v457_v20  ;;  %v1878_v34 = vpack.c.bf16 %v458_v26, %v456_v23  ;;  %v1880_v37 = vpack.c.bf16 %v495_v27, %v493_v21 }
 0x15f   : > { %v2106_v35 = vunpack.i.h.bf16 %v2104_v28  ;;  %v2105_v36 = vunpack.i.l.bf16 %v2104_v28 }
 0x160   : > { %1877 = vmatprep.subr.bf16.mxu0 %v1876_v29 }
 0x161   : > { %1879 = vmatpush1.bf16.msra.mxu0 %v1878_v34  ;;  %v492_v38 = vsel %vm455_vm6, %v2105_v36, %v2085_v4  ;;  %v494_v39 = vsel %vm455_vm6, %v2106_v35, %v2095_v19 }
 0x162   : > { %v2114_v44 = vpop.permute.xlu1 %2113  ;;  %v2109_v45 = vpop.permute.xlu0 %2108  ;;  %1881 = vmatprep.subr.bf16.mxu0 %v1880_v37  ;;  %v1882_v46 = vpack.c.bf16 %v494_v39, %v492_v38 }
 0x163   : > { %v2116_v50 = vunpack.i.h.bf16 %v2114_v44  ;;  %v2115_v52 = vunpack.i.l.bf16 %v2114_v44  ;;  %v2111_v53 = vunpack.i.h.bf16 %v2109_v45  ;;  %v2110_v54 = vunpack.i.l.bf16 %v2109_v45 }
 0x165   : > { %1883 = vmatpush1.bf16.msra.mxu0 %v1882_v46  ;;  %v529_v55 = vsel %vm455_vm6, %v2110_v54, %v2111_v53  ;;  %v531_v56 = vsel %vm455_vm6, %v2115_v52, %v2116_v50  ;;  %v673_v50 = vld [vmem:[%s3382_s1] sm:$0xff]  ;;  %v675_v53 = vld [vmem:[%s3382_s1 + $0x10] sm:$0xff] }
 0x166   : > { %v2129_v57 = vpop.permute.xlu1 %2128  ;;  %v2119_v58 = vpop.permute.xlu0 %2118  ;;  %v1884_v59 = vpack.c.bf16 %v531_v56, %v529_v55 }
 0x167   : > { %v2121_v60 = vunpack.i.h.bf16 %v2119_v58  ;;  %v2120_v61 = vunpack.i.l.bf16 %v2119_v58  ;;  %v2131_v9 = vunpack.i.h.bf16 %v2129_v57  ;;  %v2130_v10 = vunpack.i.l.bf16 %v2129_v57 }
 0x168   : > { %1885 = vmatprep.subr.bf16.mxu0 %v1884_v59 }
 0x169   : > { %v528_v62 = vsel %vm455_vm6, %v2120_v61, %v2110_v54  ;;  %v530_v63 = vsel %vm455_vm6, %v2121_v60, %v2115_v52  ;;  %v628_v21 = vsel %vm588_vm7, %v2130_v10, %v2131_v9  ;;  %v676_v52 = vld [vmem:[%s3382_s1 + $0x18] sm:$0xff] }
 0x16a   : > { %v2134_v1 = vpop.permute.xlu1 %2133  ;;  %v2124_v2 = vpop.permute.xlu0 %2123  ;;  %v1886_v3 = vpack.c.bf16 %v530_v63, %v528_v62 }
 0x16b   : > { %v2136_v13 = vunpack.i.h.bf16 %v2134_v1  ;;  %v2135_v14 = vunpack.i.l.bf16 %v2134_v1  ;;  %v2126_v15 = vunpack.i.h.bf16 %v2124_v2  ;;  %v2125_v16 = vunpack.i.l.bf16 %v2124_v2 }
 0x16c   : > { %1887 = vmatpush1.bf16.msra.mxu0 %v1886_v3 }
 0x16d   : > { %1889 = vmatprep.subr.bf16.mxu0 %v1888_v30  ;;  %v590_v24 = vsel %vm588_vm7, %v2135_v14, %v2136_v13 }
 0x16e   : > { %v2149_v4 = vpop.permute.xlu1 %2148  ;;  %v2139_v5 = vpop.permute.xlu0 %2138 }
 0x16f   : > { %v2141_v6 = vunpack.i.h.bf16 %v2139_v5  ;;  %v2140_v8 = vunpack.i.l.bf16 %v2139_v5  ;;  %v2150_v19 = vunpack.i.l.bf16 %v2149_v4  ;;  %v2151_v25 = vunpack.i.h.bf16 %v2149_v4 }
 0x170   : > { %1891 = vmatpush1.bf16.msra.mxu0 %v1890_v31 }
 0x171   : > { %1893 = vmatprep.subr.bf16.mxu0 %v2863_v49  ;;  %v592_v30 = vsel %vm588_vm7, %v2140_v8, %v2141_v6  ;;  %v589_v31 = vsel %vm588_vm7, %v2150_v19, %v2135_v14  ;;  %v626_v49 = vsel %vm588_vm7, %v2125_v16, %v2126_v15 }
 0x172   : > { %v2154_v20 = vpop.permute.xlu1 %2153  ;;  %v2144_v18 = vpop.permute.xlu0 %2143  ;;  %v1900_v26 = vpack.c.bf16 %v592_v30, %v590_v24  ;;  %v1904_v34 = vpack.c.bf16 %v628_v21, %v626_v49  ;;  %v810_v24 = vld [vmem:[#allocation7] sm:$0xff] }
 0x173   : > { %v2146_v22 = vunpack.i.h.bf16 %v2144_v18  ;;  %v2145_v23 = vunpack.i.l.bf16 %v2144_v18  ;;  %v2156_v41 = vunpack.i.h.bf16 %v2154_v20  ;;  %v2155_v43 = vunpack.i.l.bf16 %v2154_v20  ;;  %1864 = vmatmul.mubr.msk.f32.vlgmr.msra.gmra.mrb[0].mxu1 %vm455_vm6, %v810_v24 }
 0x174   : > { %1895 = vmatpush1.bf16.msra.mxu0 %v2872_v51  ;;  %v591_v51 = vsel %vm588_vm7, %v2151_v25, %v2140_v8  ;;  %902 = vmatprep.mubr.f32.mxu1 %v2515_v0 }
 0x175   : > { %1897 = vmatprep.subr.bf16.mxu0 %v1896_v47  ;;  %v1902_v47 = vpack.c.bf16 %v591_v51, %v589_v31  ;;  %v625_v37 = vsel %vm588_vm7, %v2145_v23, %v2125_v16  ;;  %v627_v38 = vsel %vm588_vm7, %v2146_v22, %v2130_v10  ;;  %v662_v45 = vsel %vm588_vm7, %v2155_v43, %v2156_v41 }
 0x176   : > { %v2159_v17 = vpop.permute.xlu0 %2158  ;;  %v2164_v27 = vpop.permute.xlu1 %2163  ;;  %v1906_v44 = vpack.c.bf16 %v627_v38, %v625_v37 }
 0x177   : > { %v2161_v28 = vunpack.i.h.bf16 %v2159_v17  ;;  %v2160_v29 = vunpack.i.l.bf16 %v2159_v17  ;;  %v2166_v35 = vunpack.i.h.bf16 %v2164_v27  ;;  %v2165_v36 = vunpack.i.l.bf16 %v2164_v27 }
 0x178   : > { %1899 = vmatpush1.bf16.msra.mxu0 %v1898_v48 }
 0x179   : > { %1901 = vmatprep.subr.bf16.mxu0 %v1900_v26  ;;  %v664_v39 = vsel %vm588_vm7, %v2160_v29, %v2161_v28  ;;  %v661_v42 = vsel %vm588_vm7, %v2165_v36, %v2155_v43  ;;  %v663_v48 = vsel %vm588_vm7, %v2166_v35, %v2160_v29 }
 0x17a   : > { %v1908_v40 = vpack.c.bf16 %v664_v39, %v662_v45  ;;  %v1910_v46 = vpack.c.bf16 %v663_v48, %v661_v42 }
 0x17c   : > { %1903 = vmatpush1.bf16.msra.mxu0 %v1902_v47 }
 0x17d   : > { %1905 = vmatprep.subr.bf16.mxu0 %v1904_v34 }
 0x180   : > { %1907 = vmatpush1.bf16.msra.mxu0 %v1906_v44 }
 0x181   : > { %1909 = vmatprep.subr.bf16.mxu0 %v1908_v40 }
 0x184   : > { %1911 = vmatpush1.bf16.msra.mxu0 %v1910_v46 }
 0x187   : > { %794 = vmatmul.mubr.f32.vlgmr.msra.gmra.mrb[0].mxu0 %v673_v50  ;;  %v716_v54 = vpop.permute.xlu0 %715  ;;  %v721_v59 = vpop.permute.xlu1 %720 }
 0x188   : > { %1863 = vmatprep.mubr.msk.f32.mxu0 %vm455_vm6, %v676_v52 }
 0x18b   : > { %800 = vmatmul.mubr.f32.gmra.mrb[2].mxu0 %v675_v53 }
 0x25a   : > { %v795_v55 = vpop.f32.mrb[0].mxu0 }
 0x25b   : > { %v796_v56 = vadd.f32 %v795_v55, %v716_v54  ;;  %v797_v57 = vpop.f32.mrb[1].mxu0  ;;  %v811_v55 = vld [vmem:[#allocation7 + $0x8] sm:$0xff] }
 0x25c   : > { %v798_v58 = vadd.f32 %v797_v57, %v716_v54  ;;  %1865 = vmatmul.mubr.msk.f32.gmra.mrb[2].mxu1 %vm455_vm6, %v811_v55  ;;  %v1194_v57 = vld [vmem:[%s3384_s3 + $0x8] sm:$0xff] }
 0x25d   : > { %v2956_v60 = vmax.f32 %v796_v56, 0.0  ;;  %v381_v56 = vld [vmem:[%s3386_s5 + $0x10] sm:$0xff]  ;;  %1866 = vmatprep.mubr.msk.f32.mxu1 %vm455_vm6, %v1194_v57 }
 0x25e   : > { %v2958_v61 = vmax.f32 %v798_v58, 0.0  ;;  %v801_v62 = vpop.f32.mrb[2].mxu0 }
 0x25f   : > { %v802_v63 = vadd.f32 %v801_v62, %v721_v59  ;;  %v803_v1 = vpop.f32.mrb[3].mxu0  ;;  %909 = vrot.lane.b32.xlu1 %v2956_v60, %s2516_s9  ;;  %v383_v62 = vld [vmem:[%s3386_s5 + $0x20] sm:$0xff] }
 0x260   : > { %v804_v2 = vadd.f32 %v803_v1, %v721_v59  ;;  %v2174_v3 = vpack.i.bf16 %v2958_v61, %v2956_v60  ;;  %v2219_v48 = vpack.i.bf16 %v2515_v0, %v2958_v61  ;;  %v382_v59 = vld [vmem:[%s3386_s5 + $0x18] sm:$0xff] }
 0x261   : > { %v2964_v4 = vmax.f32 %v802_v63, 0.0  ;;  %v384_v63 = vld [vmem:[%s3386_s5 + $0x28] sm:$0xff] }
 0x262   : > { %v2966_v5 = vmax.f32 %v804_v2, 0.0 }
 0x263   : > { %911 = vrot.lane.b32.xlu0 %v2964_v4, %s2516_s9  ;;  %913 = vrot.lane.b32.xlu1 %v2958_v61, %s2516_s9  ;;  %v2234_v6 = vpack.i.bf16 %v2964_v4, %v2956_v60  ;;  %v1934_v8 = vpack.c.bf16 %v2964_v4, %v2956_v60 }
 0x264   : > { %v2184_v9 = vpack.i.bf16 %v2966_v5, %v2964_v4  ;;  %v1932_v10 = vpack.c.bf16 %v2966_v5, %v2958_v61  ;;  %v2224_v46 = vpack.i.bf16 %v2515_v0, %v2966_v5 }
 0x267   : > { %915 = vrot.lane.b32.xlu0 %v2966_v5, %s2516_s9  ;;  %925 = vrot.lane.b32.xlu1 %v2956_v60, %s2517_s30 }
 0x26b   : > { %927 = vrot.lane.b32.xlu0 %v2964_v4, %s2517_s30  ;;  %929 = vrot.lane.b32.xlu1 %v2958_v61, %s2517_s30 }
 0x26f   : > { %931 = vrot.lane.b32.xlu0 %v2966_v5, %s2517_s30  ;;  %2170 = vrot.lane.b32.xlu1 %v2515_v0, %s2518_s20 }
 0x273   : > { %2175 = vrot.lane.b32.xlu0 %v2174_v3, %s2518_s20 }
 0x2d1   : > { %v910_v13 = vpop.permute.xlu1 %909 }
 0x2d5   : > { %v912_v14 = vpop.permute.xlu0 %911  ;;  %v914_v15 = vpop.permute.xlu1 %913 }
 0x2d6   : > { %v917_v16 = vsel %vm393_vm2, %v910_v13, %v914_v15  ;;  %v919_v19 = vsel %vm393_vm2, %v914_v15, %v910_v13 }
 0x2d7   : > { %v2998_v20 = vmul.f32 %v2782_v11, %v919_v19  ;;  %v3001_v18 = vmul.f32 %v2785_v12, %v917_v16 }
 0x2d9   : > { %v916_v25 = vpop.permute.xlu0 %915  ;;  %v926_v30 = vpop.permute.xlu1 %925  ;;  %v2179_v17 = vpack.i.bf16 %v3001_v18, %v2998_v20  ;;  %v2214_v42 = vpack.i.bf16 %v2515_v0, %v3001_v18 }
 0x2da   : > { %v918_v31 = vsel %vm393_vm2, %v912_v14, %v916_v25  ;;  %v920_v49 = vsel %vm393_vm2, %v916_v25, %v912_v14 }
 0x2db   : > { %v3011_v21 = vmul.f32 %v2782_v11, %v920_v49  ;;  %v3014_v22 = vmul.f32 %v2785_v12, %v918_v31  ;;  %2180 = vrot.lane.b32.xlu1 %v2179_v17, %s2518_s20 }
 0x2dd   : > { %v1930_v23 = vpack.c.bf16 %v3011_v21, %v2998_v20  ;;  %v928_v26 = vpop.permute.xlu0 %927  ;;  %v930_v51 = vpop.permute.xlu1 %929  ;;  %v2189_v27 = vpack.i.bf16 %v3014_v22, %v3011_v21  ;;  %v1928_v41 = vpack.c.bf16 %v3014_v22, %v3001_v18  ;;  %v2229_v50 = vpack.i.bf16 %v2515_v0, %v3014_v22 }
 0x2de   : > { %v933_v28 = vsel %vm410_vm5, %v926_v30, %v930_v51  ;;  %v935_v29 = vsel %vm410_vm5, %v930_v51, %v926_v30  ;;  %v2239_v52 = vpack.i.bf16 %v3011_v21, %v2998_v20 }
 0x2df   : > { %v3029_v43 = vmul.f32 %v2822_v32, %v933_v28  ;;  %v3032_v47 = vmul.f32 %v2825_v33, %v935_v29  ;;  %2190 = vrot.lane.b32.xlu0 %v2189_v27, %s2518_s20  ;;  %2185 = vrot.lane.b32.xlu1 %v2184_v9, %s2518_s20 }
 0x2e1   : > { %v932_v34 = vpop.permute.xlu0 %931  ;;  %v2199_v35 = vpack.i.bf16 %v3032_v47, %v3029_v43  ;;  %v2244_v53 = vpack.i.bf16 %v2515_v0, %v3032_v47  ;;  %v2171_v1 = vpop.permute.xlu1 %2170 }
 0x2e2   : > { %v934_v36 = vsel %vm410_vm5, %v928_v26, %v932_v34  ;;  %v936_v37 = vsel %vm410_vm5, %v932_v34, %v928_v26  ;;  %v2173_v15 = vunpack.i.h.bf16 %v2171_v1  ;;  %v2172_v16 = vunpack.i.l.bf16 %v2171_v1 }
 0x2e3   : > { %v3043_v38 = vmul.f32 %v2822_v32, %v934_v36  ;;  %v3046_v39 = vmul.f32 %v2825_v33, %v936_v37  ;;  %2195 = vrot.lane.b32.xlu0 %v2515_v0, %s2518_s20  ;;  %2200 = vrot.lane.b32.xlu1 %v2199_v35, %s2518_s20 }
 0x2e5   : > { %v1938_v44 = vpack.c.bf16 %v3043_v38, %v3029_v43  ;;  %v2204_v45 = vpack.i.bf16 %v3046_v39, %v3043_v38  ;;  %v1936_v40 = vpack.c.bf16 %v3046_v39, %v3032_v47  ;;  %v2249_v54 = vpack.i.bf16 %v2515_v0, %v3046_v39  ;;  %v2176_v2 = vpop.permute.xlu0 %2175 }
 0x2e6   : > { %v2254_v58 = vpack.i.bf16 %v3043_v38, %v3029_v43  ;;  %v2178_v13 = vunpack.i.h.bf16 %v2176_v2  ;;  %v2177_v14 = vunpack.i.l.bf16 %v2176_v2 }
 0x2e7   : > { %2205 = vrot.lane.b32.xlu0 %v2204_v45, %s2518_s20  ;;  %2210 = vrot.lane.b32.xlu1 %v2515_v0, %s2518_s20 }
 0x2eb   : > { %2215 = vrot.lane.b32.xlu0 %v2214_v42, %s2519_s11  ;;  %2220 = vrot.lane.b32.xlu1 %v2219_v48, %s2519_s11  ;;  %v1014_v42 = vsel %vm455_vm6, %v2177_v14, %v2178_v13 }
 0x2ef   : > { %2225 = vrot.lane.b32.xlu0 %v2224_v46, %s2519_s11  ;;  %2230 = vrot.lane.b32.xlu1 %v2229_v50, %s2519_s11 }
 0x2f3   : > { %2240 = vrot.lane.b32.xlu0 %v2239_v52, %s2519_s11  ;;  %2235 = vrot.lane.b32.xlu1 %v2234_v6, %s2519_s11 }
 0x2f7   : > { %2245 = vrot.lane.b32.xlu0 %v2244_v53, %s2519_s11  ;;  %2250 = vrot.lane.b32.xlu1 %v2249_v54, %s2519_s11 }
 0x2fb   : > { %2255 = vrot.lane.b32.xlu0 %v2254_v58, %s2519_s11  ;;  %818 = vperm.xlu1 %2168, %v381_v56  }
 0x2ff   : > { %823 = vperm.xlu0 %2167, %v382_v59   ;;  %1235 = vperm.xlu1 %2168, %v383_v62  }
 0x303   : > { %1240 = vperm.xlu0 %2167, %v384_v63  }
 0x34d   : > { %v2181_v3 = vpop.permute.xlu1 %2180 }
 0x34e   : > { %v2182_v6 = vunpack.i.l.bf16 %v2181_v3  ;;  %v2183_v9 = vunpack.i.h.bf16 %v2181_v3 }
 0x350   : > { %v977_v49 = vsel %vm455_vm6, %v2172_v16, %v2182_v6  ;;  %v978_v51 = vsel %vm455_vm6, %v2182_v6, %v2183_v9 }
 0x351   : > { %v2191_v19 = vpop.permute.xlu0 %2190  ;;  %v2186_v25 = vpop.permute.xlu1 %2185 }
 0x352   : > { %v2193_v30 = vunpack.i.h.bf16 %v2191_v19  ;;  %v2192_v17 = vunpack.i.l.bf16 %v2191_v19  ;;  %v2188_v24 = vunpack.i.h.bf16 %v2186_v25  ;;  %v2187_v31 = vunpack.i.l.bf16 %v2186_v25 }
 0x354   : > { %v979_v26 = vsel %vm455_vm6, %v2173_v15, %v2192_v17  ;;  %v980_v27 = vsel %vm455_vm6, %v2192_v17, %v2193_v30  ;;  %v1016_v28 = vsel %vm455_vm6, %v2187_v31, %v2188_v24 }
 0x355   : > { %v1918_v29 = vpack.c.bf16 %v979_v26, %v977_v49  ;;  %v2196_v34 = vpop.permute.xlu0 %2195  ;;  %v2201_v35 = vpop.permute.xlu1 %2200  ;;  %v1916_v36 = vpack.c.bf16 %v980_v27, %v978_v51  ;;  %v1920_v48 = vpack.c.bf16 %v1016_v28, %v1014_v42 }
 0x356   : > { %v2198_v37 = vunpack.i.h.bf16 %v2196_v34  ;;  %v2197_v45 = vunpack.i.l.bf16 %v2196_v34  ;;  %v2203_v52 = vunpack.i.h.bf16 %v2201_v35  ;;  %v2202_v53 = vunpack.i.l.bf16 %v2201_v35 }
 0x357   : > { %1917 = vmatprep.subr.bf16.mxu1 %v1916_v36 }
 0x358   : > { %v1013_v46 = vsel %vm455_vm6, %v2197_v45, %v2177_v14  ;;  %v1015_v50 = vsel %vm455_vm6, %v2198_v37, %v2187_v31  ;;  %1919 = vmatpush1.bf16.msra.mxu1 %v1918_v29  ;;  %v1050_v2 = vsel %vm455_vm6, %v2202_v53, %v2203_v52 }
 0x359   : > { %v1922_v54 = vpack.c.bf16 %v1015_v50, %v1013_v46  ;;  %v2206_v55 = vpop.permute.xlu0 %2205  ;;  %v2211_v56 = vpop.permute.xlu1 %2210  ;;  %1921 = vmatprep.subr.bf16.mxu1 %v1920_v48 }
 0x35a   : > { %v2208_v57 = vunpack.i.h.bf16 %v2206_v55  ;;  %v2207_v58 = vunpack.i.l.bf16 %v2206_v55  ;;  %v2213_v59 = vunpack.i.h.bf16 %v2211_v56  ;;  %v2212_v62 = vunpack.i.l.bf16 %v2211_v56  ;;  %v1196_v55 = vld [vmem:[%s3384_s3 + $0x18] sm:$0xff]  ;;  %v1195_v56 = vld [vmem:[%s3384_s3 + $0x10] sm:$0xff] }
 0x35c   : > { %v1051_v63 = vsel %vm455_vm6, %v2213_v59, %v2207_v58  ;;  %v1049_v1 = vsel %vm455_vm6, %v2212_v62, %v2202_v53  ;;  %1923 = vmatpush1.bf16.msra.mxu1 %v1922_v54  ;;  %v1052_v3 = vsel %vm455_vm6, %v2207_v58, %v2208_v57  ;;  %v1193_v54 = vld [vmem:[%s3384_s3] sm:$0xff] }
 0x35d   : > { %v1926_v6 = vpack.c.bf16 %v1051_v63, %v1049_v1  ;;  %v2216_v9 = vpop.permute.xlu0 %2215  ;;  %v2221_v13 = vpop.permute.xlu1 %2220  ;;  %v1924_v14 = vpack.c.bf16 %v1052_v3, %v1050_v2 }
 0x35e   : > { %v2218_v30 = vunpack.i.h.bf16 %v2216_v9  ;;  %v2217_v17 = vunpack.i.l.bf16 %v2216_v9  ;;  %v2223_v20 = vunpack.i.h.bf16 %v2221_v13  ;;  %v2222_v21 = vunpack.i.l.bf16 %v2221_v13 }
 0x35f   : > { %1925 = vmatprep.subr.bf16.mxu1 %v1924_v14 }
 0x360   : > { %1927 = vmatpush1.bf16.msra.mxu1 %v1926_v6  ;;  %v1110_v61 = vsel %vm588_vm7, %v2217_v17, %v2218_v30  ;;  %v1146_v39 = vsel %vm588_vm7, %v2222_v21, %v2223_v20 }
 0x361   : > { %v2226_v15 = vpop.permute.xlu0 %2225  ;;  %v2231_v16 = vpop.permute.xlu1 %2230  ;;  %1929 = vmatprep.subr.bf16.mxu1 %v1928_v41 }
 0x362   : > { %v2233_v19 = vunpack.i.h.bf16 %v2231_v16  ;;  %v2232_v25 = vunpack.i.l.bf16 %v2231_v16  ;;  %v2228_v49 = vunpack.i.h.bf16 %v2226_v15  ;;  %v2227_v26 = vunpack.i.l.bf16 %v2226_v15 }
 0x364   : > { %1931 = vmatpush1.bf16.msra.mxu1 %v1930_v23  ;;  %v1112_v18 = vsel %vm588_vm7, %v2232_v25, %v2233_v19 }
 0x365   : > { %v2241_v24 = vpop.permute.xlu0 %2240  ;;  %v2236_v31 = vpop.permute.xlu1 %2235  ;;  %1933 = vmatprep.subr.bf16.mxu1 %v1932_v10  ;;  %v1940_v5 = vpack.c.bf16 %v1112_v18, %v1110_v61  ;;  %v1148_v10 = vsel %vm588_vm7, %v2227_v26, %v2228_v49 }
 0x366   : > { %v2243_v51 = vunpack.i.h.bf16 %v2241_v24  ;;  %v2242_v27 = vunpack.i.l.bf16 %v2241_v24  ;;  %v2238_v29 = vunpack.i.h.bf16 %v2236_v31  ;;  %v2237_v60 = vunpack.i.l.bf16 %v2236_v31 }
 0x367   : > { %v1944_v36 = vpack.c.bf16 %v1148_v10, %v1146_v39 }
 0x368   : > { %1935 = vmatpush1.bf16.msra.mxu1 %v1934_v8  ;;  %v1109_v41 = vsel %vm588_vm7, %v2242_v27, %v2217_v17  ;;  %v1111_v28 = vsel %vm588_vm7, %v2243_v51, %v2232_v25  ;;  %v1147_v37 = vsel %vm588_vm7, %v2238_v29, %v2227_v26  ;;  %v1145_v45 = vsel %vm588_vm7, %v2237_v60, %v2222_v21 }
 0x369   : > { %v2246_v22 = vpop.permute.xlu0 %2245  ;;  %v2251_v23 = vpop.permute.xlu1 %2250  ;;  %1937 = vmatprep.subr.bf16.mxu1 %v1936_v40  ;;  %v1942_v40 = vpack.c.bf16 %v1111_v28, %v1109_v41  ;;  %v1946_v43 = vpack.c.bf16 %v1147_v37, %v1145_v45 }
 0x36a   : > { %v2248_v4 = vunpack.i.h.bf16 %v2246_v22  ;;  %v2247_v8 = vunpack.i.l.bf16 %v2246_v22  ;;  %v2253_v34 = vunpack.i.h.bf16 %v2251_v23  ;;  %v2252_v35 = vunpack.i.l.bf16 %v2251_v23 }
 0x36c   : > { %1939 = vmatpush1.bf16.msra.mxu1 %v1938_v44  ;;  %v1182_v46 = vsel %vm588_vm7, %v2247_v8, %v2248_v4  ;;  %v1184_v50 = vsel %vm588_vm7, %v2252_v35, %v2253_v34 }
 0x36d   : > { %v2256_v47 = vpop.permute.xlu0 %2255  ;;  %1941 = vmatprep.subr.bf16.mxu1 %v1940_v5  ;;  %v1948_v52 = vpack.c.bf16 %v1184_v50, %v1182_v46 }
 0x36e   : > { %v2258_v42 = vunpack.i.h.bf16 %v2256_v47  ;;  %v2257_v48 = vunpack.i.l.bf16 %v2256_v47 }
 0x370   : > { %1943 = vmatpush1.bf16.msra.mxu1 %v1942_v40  ;;  %v1181_v38 = vsel %vm588_vm7, %v2257_v48, %v2247_v8  ;;  %v1183_v44 = vsel %vm588_vm7, %v2258_v42, %v2252_v35 }
 0x371   : > { %1945 = vmatprep.subr.bf16.mxu1 %v1944_v36  ;;  %v1950_v53 = vpack.c.bf16 %v1183_v44, %v1181_v38 }
 0x374   : > { %1947 = vmatpush1.bf16.msra.mxu1 %v1946_v43 }
 0x375   : > { %1949 = vmatprep.subr.bf16.mxu1 %v1948_v52 }
 0x378   : > { %1951 = vmatpush1.bf16.msra.mxu1 %v1950_v53 }
 0x37a   : > { %v819_v57 = vpop.permute.xlu1 %818 }
 0x37b   : > { %1314 = vmatmul.mubr.f32.vlgmr.msra.gmra.mrb[0].mxu1 %v1193_v54 }
 0x37c   : > { %1867 = vmatprep.mubr.msk.f32.mxu1 %vm455_vm6, %v1196_v55 }
 0x37e   : > { %v824_v58 = vpop.permute.xlu0 %823  ;;  %v1236_v59 = vpop.permute.xlu1 %1235 }
 0x37f   : > { %1320 = vmatmul.mubr.f32.gmra.mrb[2].mxu1 %v1195_v56  ;;  %v1988_v62 = vadd.f32 %v1236_v59, %v819_v57  ;;  %v1655_v56 = vld [vmem:[%s3387_s6] sm:$0xf]  ;;  %v3281_v57 = vld [vmem:[#allocation9] sm:$0xff] }
 0x380   : > { %v1662_v59 = vcombine.high %v3281_v57, %v3281_v57 }
 0x382   : > { %v1241_v63 = vpop.permute.xlu0 %1240  ;;  %1868 = vmatprep.mubr.msk.f32.mxu0 %vm455_vm6, %v1662_v59 }
 0x383   : > { %v1992_v9 = vadd.f32 %v1241_v63, %v824_v58 }
 0x44e   : > { %v1315_v1 = vpop.f32.mrb[0].mxu1 }
 0x44f   : > { %v1989_v2 = vadd.f32 %v1988_v62, %v1315_v1  ;;  %v1317_v3 = vpop.f32.mrb[1].mxu1 }
 0x450   : > { %v1991_v6 = vadd.f32 %v1988_v62, %v1317_v3 }
 0x451   : > { %v3154_v13 = vmax.f32 %v1989_v2, 0.0 }
 0x452   : > { %v3156_v14 = vmax.f32 %v1991_v6, 0.0  ;;  %v1321_v15 = vpop.f32.mrb[2].mxu1 }
 0x453   : > { %v1993_v16 = vadd.f32 %v1992_v9, %v1321_v15  ;;  %1334 = vrot.lane.b32.xlu1 %v3154_v13, %s2516_s9  ;;  %v1323_v19 = vpop.f32.mrb[3].mxu1 }
 0x454   : > { %v1995_v25 = vadd.f32 %v1992_v9, %v1323_v19  ;;  %v2264_v30 = vpack.i.bf16 %v3156_v14, %v3154_v13 }
 0x455   : > { %v3162_v17 = vmax.f32 %v1993_v16, 0.0 }
 0x456   : > { %v3164_v24 = vmax.f32 %v1995_v25, 0.0 }
 0x457   : > { %1338 = vrot.lane.b32.xlu1 %v3156_v14, %s2516_s9  ;;  %1336 = vrot.lane.b32.xlu0 %v3162_v17, %s2516_s9  ;;  %v2324_v31 = vpack.i.bf16 %v3162_v17, %v3154_v13  ;;  %v1970_v49 = vpack.c.bf16 %v3162_v17, %v3154_v13 }
 0x458   : > { %v2274_v26 = vpack.i.bf16 %v3164_v24, %v3162_v17  ;;  %v1968_v51 = vpack.c.bf16 %v3164_v24, %v3156_v14  ;;  %v2314_v52 = vpack.i.bf16 %v2515_v0, %v3164_v24 }
 0x45b   : > { %1350 = vrot.lane.b32.xlu1 %v3154_v13, %s2517_s30  ;;  %1340 = vrot.lane.b32.xlu0 %v3164_v24, %s2516_s9 }
 0x45f   : > { %1354 = vrot.lane.b32.xlu1 %v3156_v14, %s2517_s30  ;;  %1352 = vrot.lane.b32.xlu0 %v3162_v17, %s2517_s30 }
 0x463   : > { %1356 = vrot.lane.b32.xlu0 %v3164_v24, %s2517_s30  ;;  %2260 = vrot.lane.b32.xlu1 %v2515_v0, %s2518_s20 }
 0x467   : > { %2265 = vrot.lane.b32.xlu0 %v2264_v30, %s2518_s20 }
 0x4c5   : > { %v1335_v27 = vpop.permute.xlu1 %1334 }
 0x4c9   : > { %v1339_v18 = vpop.permute.xlu1 %1338  ;;  %v1337_v20 = vpop.permute.xlu0 %1336 }
 0x4ca   : > { %v1342_v21 = vsel %vm393_vm2, %v1335_v27, %v1339_v18  ;;  %v1344_v22 = vsel %vm393_vm2, %v1339_v18, %v1335_v27 }
 0x4cb   : > { %v3196_v23 = vmul.f32 %v2782_v11, %v1344_v22  ;;  %v3199_v61 = vmul.f32 %v2785_v12, %v1342_v21 }
 0x4cd   : > { %v1351_v5 = vpop.permute.xlu1 %1350  ;;  %v1341_v10 = vpop.permute.xlu0 %1340  ;;  %v2269_v41 = vpack.i.bf16 %v3199_v61, %v3196_v23 }
 0x4ce   : > { %v1343_v28 = vsel %vm393_vm2, %v1337_v20, %v1341_v10  ;;  %v1345_v29 = vsel %vm393_vm2, %v1341_v10, %v1337_v20 }
 0x4cf   : > { %v3208_v60 = vmul.f32 %v2782_v11, %v1345_v29  ;;  %v3211_v4 = vmul.f32 %v2785_v12, %v1343_v28  ;;  %2270 = vrot.lane.b32.xlu1 %v2269_v41, %s2518_s20 }
 0x4d1   : > { %v1966_v8 = vpack.c.bf16 %v3208_v60, %v3196_v23  ;;  %v1355_v34 = vpop.permute.xlu1 %1354  ;;  %v1353_v35 = vpop.permute.xlu0 %1352  ;;  %v2279_v47 = vpack.i.bf16 %v3211_v4, %v3208_v60  ;;  %v1964_v12 = vpack.c.bf16 %v3211_v4, %v3199_v61  ;;  %v2319_v44 = vpack.i.bf16 %v2515_v0, %v3211_v4 }
 0x4d2   : > { %v1358_v39 = vsel %vm410_vm5, %v1351_v5, %v1355_v34  ;;  %v1360_v11 = vsel %vm410_vm5, %v1355_v34, %v1351_v5  ;;  %v2329_v53 = vpack.i.bf16 %v3208_v60, %v3196_v23 }
 0x4d3   : > { %v3225_v40 = vmul.f32 %v2822_v32, %v1358_v39  ;;  %v3228_v36 = vmul.f32 %v2825_v33, %v1360_v11  ;;  %2275 = vrot.lane.b32.xlu1 %v2274_v26, %s2518_s20  ;;  %2280 = vrot.lane.b32.xlu0 %v2279_v47, %s2518_s20 }
 0x4d5   : > { %v1357_v37 = vpop.permute.xlu0 %1356  ;;  %v2289_v45 = vpack.i.bf16 %v3228_v36, %v3225_v40  ;;  %v2334_v55 = vpack.i.bf16 %v2515_v0, %v3228_v36 }
 0x4d6   : > { %v1359_v42 = vsel %vm410_vm5, %v1353_v35, %v1357_v37  ;;  %v1361_v48 = vsel %vm410_vm5, %v1357_v37, %v1353_v35 }
 0x4d7   : > { %v3239_v46 = vmul.f32 %v2822_v32, %v1359_v42  ;;  %v3242_v50 = vmul.f32 %v2825_v33, %v1361_v48  ;;  %2290 = vrot.lane.b32.xlu1 %v2289_v45, %s2518_s20  ;;  %2285 = vrot.lane.b32.xlu0 %v2515_v0, %s2518_s20  ;;  %v2309_v32 = vpack.i.bf16 %v2515_v0, %v3156_v14 }
 0x4d8   : > { %v2304_v33 = vpack.i.bf16 %v2515_v0, %v3199_v61 }
 0x4d9   : > { %v1974_v43 = vpack.c.bf16 %v3239_v46, %v3225_v40  ;;  %v2294_v38 = vpack.i.bf16 %v3242_v50, %v3239_v46  ;;  %v1972_v7 = vpack.c.bf16 %v3242_v50, %v3228_v36  ;;  %v2339_v54 = vpack.i.bf16 %v2515_v0, %v3242_v50  ;;  %v2266_v62 = vpop.permute.xlu0 %2265 }
 0x4da   : > { %v2344_v58 = vpack.i.bf16 %v3239_v46, %v3225_v40  ;;  %v2268_v3 = vunpack.i.h.bf16 %v2266_v62  ;;  %v2267_v6 = vunpack.i.l.bf16 %v2266_v62 }
 0x4db   : > { %2300 = vrot.lane.b32.xlu1 %v2515_v0, %s2518_s20  ;;  %2295 = vrot.lane.b32.xlu0 %v2294_v38, %s2518_s20  ;;  %v2261_v0 = vpop.permute.xlu1 %2260  ;;  %s1857_s20 = sshll.u32 %s2734_s18, 3 }
 0x4dc   : > { %v2263_v9 = vunpack.i.h.bf16 %v2261_v0  ;;  %v2262_v15 = vunpack.i.l.bf16 %v2261_v0  ;;  %v1439_v35 = vsel %vm455_vm6, %v2267_v6, %v2268_v3  ;;  %s323_s23 = scalar_lea.vmem [#allocation10], %s1857_s20 }
 0x4dd   : > { %s1756_s10 = sshll.u32 %s323_s23, 4  ;;  %s3339_s10 = int_to_ptr.vmem [resolvable:$true] %s1756_s10 }
 0x4de   : > { %s2436_s16 = scalar_lea.vmem %s3339_s10, 128 }
 0x4df   : > { %2310 = vrot.lane.b32.xlu1 %v2309_v32, %s2519_s11  ;;  %2305 = vrot.lane.b32.xlu0 %v2304_v33, %s2519_s11  ;;  %p2437_p8 = scmp.ne.s32.totalorder %s3339_s10, %s2436_s16 }
 0x4e1   : > { %p2438_p1 = pnand %p2437_p8, %p3402_p0 }
 0x4e3   : > { %2320 = vrot.lane.b32.xlu1 %v2319_v44, %s2519_s11  ;;  %2315 = vrot.lane.b32.xlu0 %v2314_v52, %s2519_s11  ;;  %p2439_p3 = pneg %p2438_p1 }
 0x4e7   : > { %2325 = vrot.lane.b32.xlu1 %v2324_v31, %s2519_s11  ;;  %2330 = vrot.lane.b32.xlu0 %v2329_v53, %s2519_s11 }
 0x4eb   : > { %2340 = vrot.lane.b32.xlu1 %v2339_v54, %s2519_s11  ;;  %2335 = vrot.lane.b32.xlu0 %v2334_v55, %s2519_s11 }
 0x4ef   : > { %1658 = vperm.xlu1 %2168, %v1655_v56   ;;  %2345 = vrot.lane.b32.xlu0 %v2344_v58, %s2519_s11  ;;  %s1875_s11 = sshll.u32 %s2583_s28, 7  ;;  %s2521_s28 = smov [#allocation10]  }
 0x4f0   : > { %s3337_s14 = scalar_lea.hbm %s3388_s7, %s1875_s11  ;;  %s2440_s21 = sshll.u32 %s2521_s28, 4  ;;  %s2441_s21 = int_to_ptr.vmem [resolvable:$false] %s2440_s21 }
 0x4f1   : > { %s2442_s22 = scalar_lea.vmem %s2441_s21, 256  ;;  %p2443_p7 = scmp.lt.s32.totalorder %s3339_s10, %s2441_s21 }
 0x4f2   : > { %p2444_p9 = scmp.lt.s32.totalorder %s2442_s22, %s2436_s16 }
 0x4f4   : > { %p2445_p12 = por %p2444_p9, %p2443_p7 }
 0x4f6   : > { %p2446_p2 = pnand %p2445_p12, %p2439_p3 }
 0x541   : > { %v2271_v63 = vpop.permute.xlu1 %2270 }
 0x542   : > { %v2272_v1 = vunpack.i.l.bf16 %v2271_v63  ;;  %v2273_v2 = vunpack.i.h.bf16 %v2271_v63 }
 0x544   : > { %v1402_v27 = vsel %vm455_vm6, %v2262_v15, %v2272_v1  ;;  %v1403_v20 = vsel %vm455_vm6, %v2272_v1, %v2273_v2 }
 0x545   : > { %v2276_v16 = vpop.permute.xlu1 %2275  ;;  %v2281_v19 = vpop.permute.xlu0 %2280 }
 0x546   : > { %v2278_v25 = vunpack.i.h.bf16 %v2276_v16  ;;  %v2277_v30 = vunpack.i.l.bf16 %v2276_v16  ;;  %v2283_v31 = vunpack.i.h.bf16 %v2281_v19  ;;  %v2282_v26 = vunpack.i.l.bf16 %v2281_v19 }
 0x548   : > { %v1404_v18 = vsel %vm455_vm6, %v2263_v9, %v2282_v26  ;;  %v1405_v21 = vsel %vm455_vm6, %v2282_v26, %v2283_v31  ;;  %v1441_v22 = vsel %vm455_vm6, %v2277_v30, %v2278_v25 }
 0x549   : > { %v1954_v5 = vpack.c.bf16 %v1404_v18, %v1402_v27  ;;  %v2291_v10 = vpop.permute.xlu1 %2290  ;;  %v2286_v41 = vpop.permute.xlu0 %2285  ;;  %v1952_v28 = vpack.c.bf16 %v1405_v21, %v1403_v20  ;;  %v1956_v47 = vpack.c.bf16 %v1441_v22, %v1439_v35 }
 0x54a   : > { %v2288_v29 = vunpack.i.h.bf16 %v2286_v41  ;;  %v2287_v34 = vunpack.i.l.bf16 %v2286_v41  ;;  %v2293_v39 = vunpack.i.h.bf16 %v2291_v10  ;;  %v2292_v11 = vunpack.i.l.bf16 %v2291_v10 }
 0x54b   : > { %1953 = vmatprep.subr.bf16.mxu0 %v1952_v28 }
 0x54c   : > { %v1440_v37 = vsel %vm455_vm6, %v2288_v29, %v2277_v30  ;;  %v1438_v45 = vsel %vm455_vm6, %v2287_v34, %v2267_v6  ;;  %1955 = vmatpush1.bf16.msra.mxu0 %v1954_v5  ;;  %v1475_v55 = vsel %vm455_vm6, %v2292_v11, %v2293_v39 }
 0x54d   : > { %v1958_v42 = vpack.c.bf16 %v1440_v37, %v1438_v45  ;;  %v2301_v48 = vpop.permute.xlu1 %2300  ;;  %v2296_v38 = vpop.permute.xlu0 %2295  ;;  %1957 = vmatprep.subr.bf16.mxu0 %v1956_v47 }
 0x54e   : > { %v2303_v32 = vunpack.i.h.bf16 %v2301_v48  ;;  %v2302_v33 = vunpack.i.l.bf16 %v2301_v48  ;;  %v2298_v44 = vunpack.i.h.bf16 %v2296_v38  ;;  %v2297_v52 = vunpack.i.l.bf16 %v2296_v38 }
 0x550   : > { %v1474_v53 = vsel %vm455_vm6, %v2302_v33, %v2292_v11  ;;  %v1476_v54 = vsel %vm455_vm6, %v2303_v32, %v2297_v52  ;;  %1959 = vmatpush1.bf16.msra.mxu0 %v1958_v42  ;;  %v1477_v56 = vsel %vm455_vm6, %v2297_v52, %v2298_v44 }
 0x551   : > { %v1962_v58 = vpack.c.bf16 %v1476_v54, %v1474_v53  ;;  %v2311_v59 = vpop.permute.xlu1 %2310  ;;  %v2306_v0 = vpop.permute.xlu0 %2305  ;;  %v1960_v62 = vpack.c.bf16 %v1477_v56, %v1475_v55 }
 0x552   : > { %v2308_v6 = vunpack.i.h.bf16 %v2306_v0  ;;  %v2307_v9 = vunpack.i.l.bf16 %v2306_v0  ;;  %v2313_v23 = vunpack.i.h.bf16 %v2311_v59  ;;  %v2312_v60 = vunpack.i.l.bf16 %v2311_v59 }
 0x553   : > { %1961 = vmatprep.subr.bf16.mxu0 %v1960_v62 }
 0x554   : > { %1963 = vmatpush1.bf16.msra.mxu0 %v1962_v58  ;;  %v1535_v14 = vsel %vm588_vm7, %v2307_v9, %v2308_v6  ;;  %v1571_v50 = vsel %vm588_vm7, %v2312_v60, %v2313_v23 }
 0x555   : > { %v2321_v63 = vpop.permute.xlu1 %2320  ;;  %v2316_v1 = vpop.permute.xlu0 %2315  ;;  %1965 = vmatprep.subr.bf16.mxu0 %v1964_v12 }
 0x556   : > { %v2323_v2 = vunpack.i.h.bf16 %v2321_v63  ;;  %v2322_v3 = vunpack.i.l.bf16 %v2321_v63  ;;  %v2318_v19 = vunpack.i.h.bf16 %v2316_v1  ;;  %v2317_v25 = vunpack.i.l.bf16 %v2316_v1 }
 0x558   : > { %1967 = vmatpush1.bf16.msra.mxu0 %v1966_v8  ;;  %v1537_v61 = vsel %vm588_vm7, %v2322_v3, %v2323_v2 }
 0x559   : > { %v2326_v15 = vpop.permute.xlu1 %2325  ;;  %v2331_v16 = vpop.permute.xlu0 %2330  ;;  %1969 = vmatprep.subr.bf16.mxu0 %v1968_v51  ;;  %v1976_v24 = vpack.c.bf16 %v1537_v61, %v1535_v14  ;;  %v1573_v51 = vsel %vm588_vm7, %v2317_v25, %v2318_v19 }
 0x55a   : > { %v2333_v30 = vunpack.i.h.bf16 %v2331_v16  ;;  %v2332_v31 = vunpack.i.l.bf16 %v2331_v16  ;;  %v2328_v12 = vunpack.i.h.bf16 %v2326_v15  ;;  %v2327_v26 = vunpack.i.l.bf16 %v2326_v15 }
 0x55b   : > { %v1980_v21 = vpack.c.bf16 %v1573_v51, %v1571_v50 }
 0x55c   : > { %1971 = vmatpush1.bf16.msra.mxu0 %v1970_v49  ;;  %v1536_v27 = vsel %vm588_vm7, %v2333_v30, %v2322_v3  ;;  %v1534_v13 = vsel %vm588_vm7, %v2332_v31, %v2307_v9  ;;  %v1570_v22 = vsel %vm588_vm7, %v2327_v26, %v2312_v60  ;;  %v1572_v5 = vsel %vm588_vm7, %v2328_v12, %v2317_v25 }
 0x55d   : > { %v2341_v4 = vpop.permute.xlu1 %2340  ;;  %v2336_v8 = vpop.permute.xlu0 %2335  ;;  %1973 = vmatprep.subr.bf16.mxu0 %v1972_v7  ;;  %v1978_v7 = vpack.c.bf16 %v1536_v27, %v1534_v13  ;;  %v1982_v40 = vpack.c.bf16 %v1572_v5, %v1570_v22 }
 0x55e   : > { %v2343_v17 = vunpack.i.h.bf16 %v2341_v4  ;;  %v2342_v49 = vunpack.i.l.bf16 %v2341_v4  ;;  %v2338_v18 = vunpack.i.h.bf16 %v2336_v8  ;;  %v2337_v20 = vunpack.i.l.bf16 %v2336_v8 }
 0x560   : > { %1975 = vmatpush1.bf16.msra.mxu0 %v1974_v43  ;;  %v1607_v28 = vsel %vm588_vm7, %v2337_v20, %v2338_v18  ;;  %v1609_v29 = vsel %vm588_vm7, %v2342_v49, %v2343_v17 }
 0x561   : > { %v2346_v36 = vpop.permute.xlu0 %2345  ;;  %1977 = vmatprep.subr.bf16.mxu0 %v1976_v24  ;;  %v1984_v34 = vpack.c.bf16 %v1609_v29, %v1607_v28 }
 0x562   : > { %v2348_v10 = vunpack.i.h.bf16 %v2346_v36  ;;  %v2347_v41 = vunpack.i.l.bf16 %v2346_v36 }
 0x564   : > { %1979 = vmatpush1.bf16.msra.mxu0 %v1978_v7  ;;  %v1608_v46 = vsel %vm588_vm7, %v2348_v10, %v2342_v49  ;;  %v1606_v43 = vsel %vm588_vm7, %v2347_v41, %v2337_v20 }
 0x565   : > { %1981 = vmatprep.subr.bf16.mxu0 %v1980_v21  ;;  %v1986_v35 = vpack.c.bf16 %v1608_v46, %v1606_v43 }
 0x568   : > { %1983 = vmatpush1.bf16.msra.mxu0 %v1982_v40 }
 0x569   : > { %1985 = vmatprep.subr.bf16.mxu0 %v1984_v34 }
 0x56c   : > { %1987 = vmatpush1.bf16.msra.mxu0 %v1986_v35 }
 0x56e   : > { %v1659_v47 = vpop.permute.xlu1 %1658 }
 0x56f   : > { %1730 = vmatmul.mubr.f32.vlgmr.msra.gmra.mrb[4].mxu0 %v3281_v57 }
 0x642   : > { %v1731_v39 = vpop.f32.mrb[4].mxu0 }
 0x643   : > { %v1732_v11 = vadd.f32 %v1731_v39, %v1659_v47  ;;  %v1733_v37 = vpop.f32.mrb[5].mxu0 }
 0x644   : > { %v1734_v45 = vadd.f32 %v1733_v37, %v1659_v47 }
 0x646   : > { %v1738_v42 = vcombine.low %v1732_v11, %v1734_v45 }
 0x648   : > { %1740 = vst [vmem:[%s323_s23] sm:$0xff] %v1738_v42 }
 0x649   : > { %2449 = shalt.err (!%p2446_p2)
}
 0x64a   : > { %s2450_s18 = scalar_lea.hbm %s3337_s14, 128  ;;  %s2454_s20 = scalar_lea.hbm %s3388_s7, 256 }
 0x64b   : > { %p2451_p13 = scmp.ne.s32.totalorder %s3337_s14, %s2450_s18  ;;  %p2455_p4 = scmp.lt.u32.totalorder %s3337_s14, %s3388_s7 }
 0x64c   : > { %p2456_p5 = scmp.lt.u32.totalorder %s2454_s20, %s2450_s18  ;;  %p2458_p8 = scmp.lt.u32.totalorder %s2450_s18, %s3337_s14 }
 0x64d   : > { %p2452_p6 = pnand %p2451_p13, %p3402_p0 }
 0x64e   : > { %p2457_p11 = por %p2456_p5, %p2455_p4 }
 0x64f   : > { %p2453_p10 = pneg %p2452_p6 }
 0x650   : > { %p2459_p1 = por %p2458_p8, %p2457_p11 }
 0x652   : > { %p2460_p3 = pnand %p2459_p1, %p2453_p10 }
 0x654   : > { %2463 = shalt.err (!%p2460_p3)
}
 0x655   : > { %2010 = dma.vmem_to_hbm [thread:$0]  (%p3402_p0), %s3339_s10, 128, %s3337_s14, %s1742_s19  }
 0x656 PF: > { %s1768_s17 = sand.u32 1, %s2494_s24   ;;  %p3403_p7 = scmp.ne.s32.totalorder %s3393_s8, 0 }
 0x657   : > { %p3404_p9 = scmp.ge.s32.totalorder %s2506_s27, 2  ;;  %s1769_s12 = scalar_lea.sflag [#allocation6], %s1768_s17 }
 0x659   : > { %p2024_p12 = pnand %p3404_p9, %p3403_p7 }
 0x65b   : > { %2489 = dma.done.wait (!%p2024_p12), %s1769_s12, 128  }
 0x65c   : > { %2491 = vsyncadd (!%p2024_p12), %s1769_s12, 4294967168  ;;  %p21_p2 = scmp.ge.s32.totalorder %s2672_s29, 4   ;;  %s3405_s24 = smov %s2498_s25 }
 0x65d   : > { %s3406_s25 = smov %s2502_s26  ;;  %s3407_s26 = smov %s2688_s15 }
 0x65e   : > { %s3408_s27 = smov %s2672_s29  ;;  %23 = sbr.rel (!%p21_p2) target bundleno = 6 (0x6), region = 101 }
 0x665   :  { %1774 = vsyncpa [#allocation5], 1 }
 0x666   :  { %1776 = vsyncpa [#allocation5 + $0x1], 1 }
 0x667   :  { %1777 = vsyncpa [#allocation8], 1 }
 0x668   :  { %1778 = vsyncpa [#allocation6], 1 }
 0x669   :  { %1780 = vsyncpa [#allocation6 + $0x1], 1 }

</bundles_post_ra>
